<compile_context>
chip_gen: v7x
topology: tpu7x:2x2x1
jax: 0.10.0
libtpu: 0.0.40
codegen_flags: <defaults>
</compile_context>

<pallas_src>
import functools

import jax
import jax.numpy as jnp
from jax import lax
from jax.experimental import pallas as pl
from jax.experimental.pallas import tpu as pltpu


def _round_up(x, m):
    return (x + m - 1) // m * m


# ---------------------------------------------------------------------------
# Pallas kernels
# ---------------------------------------------------------------------------
def _conv3x3_gnstats_kernel(a0_ref, a1_ref, a2_ref, w_ref, b_ref,
                            o_ref, s1_ref, s2_ref, *, H, W):
    """One (n, d) output plane of a 3x3x3 'same' conv + fused GN statistics.

    a{0,1,2}_ref : (1, 1, (H+2)*W, 3*Cin) bf16  padded planes d, d+1, d+2
                   (kw taps folded into the channel axis by the wrapper).
    w_ref        : (9, 3*Cin, Cp) bf16          weights indexed by kd*3+kh.
    b_ref        : (1, Cp) f32                  bias (zero-padded to Cp).
    o_ref        : (1, 1, H*W, Cp) f32          conv output plane.
    s1/s2_ref    : (1, 1, Cp) f32               per-n channel sum / sumsq,
                                                accumulated over the d axis.
    """
    HWo = H * W
    a_refs = (a0_ref, a1_ref, a2_ref)

    acc = None
    for kd in range(3):
        for kh in range(3):
            a = a_refs[kd][0, 0, pl.ds(kh * W, HWo), :]          # (HWo, 3Cin) bf16
            part = jnp.dot(a, w_ref[kd * 3 + kh],
                           preferred_element_type=jnp.float32)   # (HWo, Cp) f32
            acc = part if acc is None else acc + part
    out = acc + b_ref[...]                                       # (HWo, Cp) f32
    o_ref[0, 0] = out

    s1 = jnp.sum(out, axis=0, keepdims=True)                     # (1, Cp)
    s2 = jnp.sum(out * out, axis=0, keepdims=True)

    d = pl.program_id(1)

    @pl.when(d == 0)
    def _():
        s1_ref[0] = s1
        s2_ref[0] = s2

    @pl.when(d > 0)
    def _():
        s1_ref[0] += s1
        s2_ref[0] += s2


def _gn_apply_relu_kernel(x_ref, sc_ref, sh_ref, o_ref):
    y = x_ref[0, 0] * sc_ref[0] + sh_ref[0]
    o_ref[0, 0] = jnp.maximum(y, 0.0).astype(o_ref.dtype)


def _gn_apply_res_relu_kernel(x_ref, sc_ref, sh_ref, res_ref, o_ref):
    y = x_ref[0, 0] * sc_ref[0] + sh_ref[0] + res_ref[0, 0].astype(jnp.float32)
    o_ref[0, 0] = jnp.maximum(y, 0.0).astype(o_ref.dtype)


def _matmul_bias_kernel(a_ref, w_ref, b_ref, o_ref):
    o_ref[...] = (jnp.dot(a_ref[...], w_ref[...],
                          preferred_element_type=jnp.float32) + b_ref[...])


# ---------------------------------------------------------------------------
# Conv3d 3x3x3 (+ fused GroupNorm stats)
# ---------------------------------------------------------------------------
def _build_xwf(x_ndhwc):
    """(N, D, H, W, C) -> (N, D+2, (H+2)*W, 3*C) bf16, padded, kw folded into C."""
    N, D, H, W, C = x_ndhwc.shape
    xp = jnp.pad(x_ndhwc, ((0, 0), (1, 1), (1, 1), (1, 1), (0, 0)))
    xw = jnp.stack([xp[:, :, :, kw:kw + W, :] for kw in range(3)], axis=4)
    return xw.reshape(N, D + 2, (H + 2) * W, 3 * C).astype(jnp.bfloat16)


def _build_wk(w_oidhw, cp):
    """(Cout, Cin, 3, 3, 3) -> (9, 3*Cin, Cp) bf16 with kk = kw*Cin + ci."""
    Cout, Cin = w_oidhw.shape[:2]
    wt = jnp.transpose(w_oidhw, (2, 3, 4, 1, 0))        # (kd, kh, kw, Cin, Cout)
    wk = wt.reshape(9, 3 * Cin, Cout)
    return jnp.pad(wk, ((0, 0), (0, 0), (0, cp - Cout))).astype(jnp.bfloat16)


def conv3x3_gn_stats(x_ndhwc, w_oidhw, bias, cp):
    """3x3x3 'same' conv (bf16 MXU operands, f32 accum) + per-channel sum/sumsq."""
    N, D, H, W, Cin = x_ndhwc.shape
    Cout = w_oidhw.shape[0]
    K = 3 * Cin
    HW2 = (H + 2) * W
    HWo = H * W

    xwf = _build_xwf(x_ndhwc)
    wk = _build_wk(w_oidhw, cp)
    b = jnp.pad(bias, (0, cp - Cout)).reshape(1, cp).astype(jnp.float32)

    def a_spec(kd):
        # Same padded array passed 3x; spec kd reads plane d + kd (size-1 blocks).
        return pl.BlockSpec((1, 1, HW2, K), lambda n, d, kd=kd: (n, d + kd, 0, 0))

    kernel = functools.partial(_conv3x3_gnstats_kernel, H=H, W=W)
    out, s1, s2 = pl.pallas_call(
        kernel,
        out_shape=(jax.ShapeDtypeStruct((N, D, HWo, cp), jnp.float32),
                   jax.ShapeDtypeStruct((N, 1, cp), jnp.float32),
                   jax.ShapeDtypeStruct((N, 1, cp), jnp.float32)),
        grid=(N, D),
        in_specs=[a_spec(0), a_spec(1), a_spec(2),
                  pl.BlockSpec((9, K, cp), lambda n, d: (0, 0, 0)),
                  pl.BlockSpec((1, cp), lambda n, d: (0, 0))],
        out_specs=(pl.BlockSpec((1, 1, HWo, cp), lambda n, d: (n, d, 0, 0)),
                   pl.BlockSpec((1, 1, cp), lambda n, d: (n, 0, 0)),
                   pl.BlockSpec((1, 1, cp), lambda n, d: (n, 0, 0))),
        compiler_params=pltpu.CompilerParams(
            dimension_semantics=("parallel", "arbitrary")),
    )(xwf, xwf, xwf, wk, b)
    return out, s1, s2


# ---------------------------------------------------------------------------
# GroupNorm: tiny XLA epilogue (scale/shift) + lane-dense Pallas apply kernel
# ---------------------------------------------------------------------------
def _gn_scale_shift(s1, s2, gamma, beta, groups, cout, cp, count):
    n = s1.shape[0]
    cg = cout // groups
    g1 = s1[:, 0, :cout].reshape(n, groups, cg).sum(-1)
    g2 = s2[:, 0, :cout].reshape(n, groups, cg).sum(-1)
    mean = g1 / count
    var = g2 / count - mean * mean                      # biased, PyTorch-style
    inv = lax.rsqrt(var + 1e-5)
    mean_c = jnp.repeat(mean, cg, axis=1)               # (n, Cout)
    inv_c = jnp.repeat(inv, cg, axis=1)
    scale = gamma[None, :] * inv_c
    shift = beta[None, :] - mean_c * scale
    pad = ((0, 0), (0, cp - cout))
    scale = jnp.pad(scale, pad).astype(jnp.float32).reshape(n, 1, cp)
    shift = jnp.pad(shift, pad).astype(jnp.float32).reshape(n, 1, cp)
    return scale, shift


def gn_apply(x, scale, shift, residual=None, out_dtype=jnp.float32):
    """y = relu(x * scale + shift (+ residual)) on the (N, D, H*W, Cp) layout."""
    N, D, HWo, cp = x.shape
    x_spec = pl.BlockSpec((1, 1, HWo, cp), lambda n, d: (n, d, 0, 0))
    v_spec = pl.BlockSpec((1, 1, cp), lambda n, d: (n, 0, 0))
    in_specs = [x_spec, v_spec, v_spec]
    args = [x, scale, shift]
    kernel = _gn_apply_relu_kernel
    if residual is not None:
        in_specs.append(x_spec)
        args.append(residual)
        kernel = _gn_apply_res_relu_kernel
    return pl.pallas_call(
        kernel,
        out_shape=jax.ShapeDtypeStruct((N, D, HWo, cp), out_dtype),
        grid=(N, D),
        in_specs=in_specs,
        out_specs=x_spec,
        compiler_params=pltpu.CompilerParams(
            dimension_semantics=("parallel", "parallel")),
    )(*args)


# ---------------------------------------------------------------------------
# 1x1x1 skip conv (plain tiled matmul, M padded to the tile size)
# ---------------------------------------------------------------------------
def conv1x1(x_ndhwc, w_oidhw, bias, cp, tm=256):
    N, D, H, W, Cin = x_ndhwc.shape
    Cout = w_oidhw.shape[0]
    M = N * D * H * W
    Mp = _round_up(M, tm)
    a = jnp.pad(x_ndhwc.reshape(M, Cin).astype(jnp.bfloat16), ((0, Mp - M), (0, 0)))
    wmat = jnp.pad(w_oidhw.reshape(Cout, Cin).T,
                   ((0, 0), (0, cp - Cout))).astype(jnp.bfloat16)
    b = jnp.pad(bias, (0, cp - Cout)).reshape(1, cp).astype(jnp.float32)
    out = pl.pallas_call(
        _matmul_bias_kernel,
        out_shape=jax.ShapeDtypeStruct((Mp, cp), jnp.float32),
        grid=(Mp // tm,),
        in_specs=[pl.BlockSpec((tm, Cin), lambda i: (i, 0)),
                  pl.BlockSpec((Cin, cp), lambda i: (0, 0)),
                  pl.BlockSpec((1, cp), lambda i: (0, 0))],
        out_specs=pl.BlockSpec((tm, cp), lambda i: (i, 0)),
        compiler_params=pltpu.CompilerParams(dimension_semantics=("parallel",)),
    )(a, wmat, b)
    return out[:M].reshape(N, D, H * W, cp)


# ---------------------------------------------------------------------------
# ResidualBlock3D forward (Pallas)
# ---------------------------------------------------------------------------
def residual_block_3d(x_ncdhw, params):
    x = jnp.transpose(x_ncdhw, (0, 2, 3, 4, 1)).astype(jnp.float32)   # NDHWC
    N, D, H, W, Cin = x.shape
    Cout = params["conv1_w"].shape[0]
    groups = min(32, Cout // 4)
    assert Cout % groups == 0, (Cout, groups)
    cg = Cout // groups
    cp = _round_up(Cout, 128)                      # lane-dense channel padding
    HWo = H * W
    count = D * HWo * cg                           # elements per (n, group)

    # skip connection, already in the (N, D, H*W, Cp) working layout
    if Cin != Cout:
        identity = conv1x1(x, params["skip_w"], params["skip_b"], cp)
    else:
        identity = jnp.pad(x.reshape(N, D, HWo, Cin),
                           ((0, 0), (0, 0), (0, 0), (0, cp - Cin)))

    # conv1 -> GN1 -> ReLU
    h1, s1, s2 = conv3x3_gn_stats(x, params["conv1_w"], params["conv1_b"], cp)
    sc1, sh1 = _gn_scale_shift(s1, s2, params["gn1_w"], params["gn1_b"],
                               groups, Cout, cp, count)
    a1 = gn_apply(h1, sc1, sh1, out_dtype=jnp.bfloat16)   # bf16 feed for conv2

    # conv2 -> GN2 -> (+identity) -> ReLU
    a1_ndhwc = a1[..., :Cout].reshape(N, D, H, W, Cout)
    h2, t1, t2 = conv3x3_gn_stats(a1_ndhwc, params["conv2_w"],
                                  params["conv2_b"], cp)
    sc2, sh2 = _gn_scale_shift(t1, t2, params["gn2_w"], params["gn2_b"],
                               groups, Cout, cp, count)
    out = gn_apply(h2, sc2, sh2, residual=identity, out_dtype=jnp.float32)

    out = out[..., :Cout].reshape(N, D, H, W, Cout)
    return jnp.transpose(out, (0, 4, 1, 2, 3))            # back to NCDHW


# ---------------------------------------------------------------------------
# Pure-JAX reference (PyTorch semantics); conv_dtype controls MXU operand dtype
# ---------------------------------------------------------------------------
def residual_block_3d_ref(x, params, conv_dtype=jnp.float32):
    def conv3d(x, w, b, k):
        out = lax.conv_general_dilated(
            x.astype(conv_dtype), w.astype(conv_dtype),
            window_strides=(1, 1, 1), padding=[(k // 2, k // 2)] * 3,
            dimension_numbers=("NCDHW", "OIDHW", "NCDHW"),
            preferred_element_type=jnp.float32)
        return out + b.reshape(1, -1, 1, 1, 1)

    def gn(x, gamma, beta, G):
        N, C, D, H, W = x.shape
        xg = x.reshape(N, G, C // G, D, H, W)
        mean = xg.mean(axis=(2, 3, 4, 5), keepdims=True)
        var = ((xg - mean) ** 2).mean(axis=(2, 3, 4, 5), keepdims=True)
        y = ((xg - mean) / jnp.sqrt(var + 1e-5)).reshape(N, C, D, H, W)
        return y * gamma.reshape(1, -1, 1, 1, 1) + beta.reshape(1, -1, 1, 1, 1)

    Cin = x.shape[1]
    Cout = params["conv1_w"].shape[0]
    G = min(32, Cout // 4)
    if Cin != Cout:
        identity = conv3d(x, params["skip_w"], params["skip_b"], 1)
    else:
        identity = x
    out = jax.nn.relu(gn(conv3d(x, params["conv1_w"], params["conv1_b"], 3),
                         params["gn1_w"], params["gn1_b"], G))
    out = gn(conv3d(out, params["conv2_w"], params["conv2_b"], 3),
             params["gn2_w"], params["gn2_b"], G)
    return jax.nn.relu(out + identity)


# ---------------------------------------------------------------------------
if __name__ == "__main__":
    N, Cin, Cout = 2, 4, 8
    D, H, W = 4, 8, 8

    key = jax.random.PRNGKey(0)
    ks = jax.random.split(key, 11)
    params = {
        "conv1_w": 0.1 * jax.random.normal(ks[0], (Cout, Cin, 3, 3, 3), jnp.float32),
        "conv1_b": 0.1 * jax.random.normal(ks[1], (Cout,), jnp.float32),
        "gn1_w": 1.0 + 0.1 * jax.random.normal(ks[2], (Cout,), jnp.float32),
        "gn1_b": 0.1 * jax.random.normal(ks[3], (Cout,), jnp.float32),
        "conv2_w": 0.1 * jax.random.normal(ks[4], (Cout, Cout, 3, 3, 3), jnp.float32),
        "conv2_b": 0.1 * jax.random.normal(ks[5], (Cout,), jnp.float32),
        "gn2_w": 1.0 + 0.1 * jax.random.normal(ks[6], (Cout,), jnp.float32),
        "gn2_b": 0.1 * jax.random.normal(ks[7], (Cout,), jnp.float32),
        "skip_w": 0.1 * jax.random.normal(ks[8], (Cout, Cin, 1, 1, 1), jnp.float32),
        "skip_b": 0.1 * jax.random.normal(ks[9], (Cout,), jnp.float32),
    }
    x = jax.random.normal(ks[10], (N, Cin, D, H, W), jnp.float32)

    out = jax.block_until_ready(jax.jit(residual_block_3d)(x, params))
    assert out.shape == (N, Cout, D, H, W), out.shape

    # Apples-to-apples check: reference with the same bf16 MXU-operand rounding.
    ref_bf16 = jax.block_until_ready(
        jax.jit(functools.partial(residual_block_3d_ref,
                                  conv_dtype=jnp.bfloat16))(x, params))
    err_bf16 = float(jnp.max(jnp.abs(out - ref_bf16)))
    assert err_bf16 < 2e-2, f"max abs error vs bf16-operand reference = {err_bf16}"

    # Sanity check vs the full-f32 reference (bounded by bf16 operand rounding).
    ref_f32 = jax.block_until_ready(jax.jit(residual_block_3d_ref)(x, params))
    err_f32 = float(jnp.max(jnp.abs(out - ref_f32)))
    assert err_f32 < 5e-2, f"max abs error vs f32 reference = {err_f32}"

    print("KERNEL_OK")
</pallas_src>

<mosaic_0001>
module attributes {stable_mosaic.version = 11 : i64} {
  func.func @_gn_apply_relu_kernel(%arg0: i32, %arg1: i32, %arg2: memref<1x1x64x128xf32, #tpu.memory_space<vmem>>, %arg3: memref<1x1x128xf32, #tpu.memory_space<vmem>>, %arg4: memref<1x1x128xf32, #tpu.memory_space<vmem>>, %arg5: memref<1x1x64x128xbf16, #tpu.memory_space<vmem>>) attributes {dimension_semantics = [#tpu.dimension_semantics<parallel>, #tpu.dimension_semantics<parallel>], iteration_bounds = array<i64: 2, 4>, scalar_prefetch = 0 : i64, scratch_operands = 0 : i64, tpu.core_type = #tpu.core_type<tc>, window_params = [{transform_indices = @transform_0, window_bounds = array<i64: 1, 1, 64, 128>}, {transform_indices = @transform_1, window_bounds = array<i64: 1, 1, 128>}, {transform_indices = @transform_2, window_bounds = array<i64: 1, 1, 128>}, {transform_indices = @transform_3, window_bounds = array<i64: 1, 1, 64, 128>}]} {
    %c0 = arith.constant 0 : index
    %c0_0 = arith.constant 0 : index
    %c0_1 = arith.constant 0 : index
    %c0_2 = arith.constant 0 : index
    %0 = vector.load %arg2[%c0, %c0_0, %c0_1, %c0_2] : memref<1x1x64x128xf32, #tpu.memory_space<vmem>>, vector<1x1x64x128xf32>
    %1 = vector.shape_cast %0 : vector<1x1x64x128xf32> to vector<64x128xf32>
    %c0_3 = arith.constant 0 : index
    %c0_4 = arith.constant 0 : index
    %c0_5 = arith.constant 0 : index
    %2 = vector.load %arg3[%c0_3, %c0_4, %c0_5] : memref<1x1x128xf32, #tpu.memory_space<vmem>>, vector<1x1x128xf32>
    %3 = vector.shape_cast %2 : vector<1x1x128xf32> to vector<1x128xf32>
    %4 = vector.broadcast %3 : vector<1x128xf32> to vector<64x128xf32>
    %5 = arith.mulf %1, %4 : vector<64x128xf32>
    %c0_6 = arith.constant 0 : index
    %c0_7 = arith.constant 0 : index
    %c0_8 = arith.constant 0 : index
    %6 = vector.load %arg4[%c0_6, %c0_7, %c0_8] : memref<1x1x128xf32, #tpu.memory_space<vmem>>, vector<1x1x128xf32>
    %7 = vector.shape_cast %6 : vector<1x1x128xf32> to vector<1x128xf32>
    %8 = vector.broadcast %7 : vector<1x128xf32> to vector<64x128xf32>
    %9 = arith.addf %5, %8 : vector<64x128xf32>
    %cst = arith.constant 0.000000e+00 : f32
    %10 = vector.broadcast %cst : f32 to vector<64x128xf32>
    %11 = arith.maximumf %9, %10 : vector<64x128xf32>
    %12 = arith.truncf %11 : vector<64x128xf32> to vector<64x128xbf16>
    %c0_9 = arith.constant 0 : index
    %c0_10 = arith.constant 0 : index
    %c0_11 = arith.constant 0 : index
    %c0_12 = arith.constant 0 : index
    %13 = vector.load %arg5[%c0_9, %c0_10, %c0_11, %c0_12] : memref<1x1x64x128xbf16, #tpu.memory_space<vmem>>, vector<1x1x64x128xbf16>
    %14 = vector.shape_cast %13 : vector<1x1x64x128xbf16> to vector<64x128xbf16>
    %15 = vector.shape_cast %12 : vector<64x128xbf16> to vector<1x1x64x128xbf16>
    tpu.vector_store %arg5[%c0_9, %c0_10, %c0_11, %c0_12], %15 {strides = array<i32>} : memref<1x1x64x128xbf16, #tpu.memory_space<vmem>>, vector<1x1x64x128xbf16>,
    return
  }
  func.func @transform_0(%arg0: i32, %arg1: i32) -> (i32, i32, i32, i32) {
    %c0_i32 = arith.constant 0 : i32
    %c0_i32_0 = arith.constant 0 : i32
    %c0_i32_1 = arith.constant 0 : i32
    return %arg0, %arg1, %c0_i32, %c0_i32_0 : i32, i32, i32, i32
  }
  func.func @transform_1(%arg0: i32, %arg1: i32) -> (i32, i32, i32) {
    %c0_i32 = arith.constant 0 : i32
    %c0_i32_0 = arith.constant 0 : i32
    %c0_i32_1 = arith.constant 0 : i32
    return %arg0, %c0_i32, %c0_i32_0 : i32, i32, i32
  }
  func.func @transform_2(%arg0: i32, %arg1: i32) -> (i32, i32, i32) {
    %c0_i32 = arith.constant 0 : i32
    %c0_i32_0 = arith.constant 0 : i32
    %c0_i32_1 = arith.constant 0 : i32
    return %arg0, %c0_i32, %c0_i32_0 : i32, i32, i32
  }
  func.func @transform_3(%arg0: i32, %arg1: i32) -> (i32, i32, i32, i32) {
    %c0_i32 = arith.constant 0 : i32
    %c0_i32_0 = arith.constant 0 : i32
    %c0_i32_1 = arith.constant 0 : i32
    return %arg0, %arg1, %c0_i32, %c0_i32_0 : i32, i32, i32, i32
  }
}

module attributes {stable_mosaic.version = 11 : i64} {
  func.func @_conv3x3_gnstats_kernel(%arg0: i32, %arg1: i32, %arg2: memref<1x1x80x12xbf16, #tpu.memory_space<vmem>>, %arg3: memref<1x1x80x12xbf16, #tpu.memory_space<vmem>>, %arg4: memref<1x1x80x12xbf16, #tpu.memory_space<vmem>>, %arg5: memref<9x12x128xbf16, #tpu.memory_space<vmem>>, %arg6: memref<1x128xf32, #tpu.memory_space<vmem>>, %arg7: memref<1x1x64x128xf32, #tpu.memory_space<vmem>>, %arg8: memref<1x1x128xf32, #tpu.memory_space<vmem>>, %arg9: memref<1x1x128xf32, #tpu.memory_space<vmem>>) attributes {dimension_semantics = [#tpu.dimension_semantics<parallel>, #tpu.dimension_semantics<arbitrary>], iteration_bounds = array<i64: 2, 4>, scalar_prefetch = 0 : i64, scratch_operands = 0 : i64, tpu.core_type = #tpu.core_type<tc>, window_params = [{transform_indices = @transform_0, window_bounds = array<i64: 1, 1, 80, 12>}, {transform_indices = @transform_1, window_bounds = array<i64: 1, 1, 80, 12>}, {transform_indices = @transform_2, window_bounds = array<i64: 1, 1, 80, 12>}, {pipeline_mode = #tpu.pipeline_mode<synchronous>, transform_indices = @transform_3, window_bounds = array<i64: 9, 12, 128>}, {pipeline_mode = #tpu.pipeline_mode<synchronous>, transform_indices = @transform_4, window_bounds = array<i64: 1, 128>}, {transform_indices = @transform_5, window_bounds = array<i64: 1, 1, 64, 128>}, {transform_indices = @transform_6, window_bounds = array<i64: 1, 1, 128>}, {transform_indices = @transform_7, window_bounds = array<i64: 1, 1, 128>}]} {
    %c0 = arith.constant 0 : index
    %c0_0 = arith.constant 0 : index
    %c0_1 = arith.constant 0 : index
    %c0_2 = arith.constant 0 : index
    %0 = vector.load %arg2[%c0, %c0_0, %c0_1, %c0_2] : memref<1x1x80x12xbf16, #tpu.memory_space<vmem>>, vector<1x1x64x12xbf16>
    %1 = vector.shape_cast %0 : vector<1x1x64x12xbf16> to vector<64x12xbf16>
    %c0_3 = arith.constant 0 : index
    %c0_4 = arith.constant 0 : index
    %c0_5 = arith.constant 0 : index
    %2 = vector.load %arg5[%c0_3, %c0_4, %c0_5] : memref<9x12x128xbf16, #tpu.memory_space<vmem>>, vector<1x12x128xbf16>
    %3 = vector.shape_cast %2 : vector<1x12x128xbf16> to vector<12x128xbf16>
    %cst = arith.constant dense<0.000000e+00> : vector<64x128xf32>
    %4 = tpu.matmul %1, %3, %cst {dimension_numbers = #tpu.dot_dimension_numbers<[1], [0], [0], [1], [0, 0, 1, 1], [], []>} : vector<64x12xbf16>, vector<12x128xbf16>, vector<64x128xf32> -> vector<64x128xf32>
    %c0_6 = arith.constant 0 : index
    %c0_7 = arith.constant 0 : index
    %c8 = arith.constant 8 : index
    %c0_8 = arith.constant 0 : index
    %5 = vector.load %arg2[%c0_6, %c0_7, %c8, %c0_8] : memref<1x1x80x12xbf16, #tpu.memory_space<vmem>>, vector<1x1x64x12xbf16>
    %6 = vector.shape_cast %5 : vector<1x1x64x12xbf16> to vector<64x12xbf16>
    %c1 = arith.constant 1 : index
    %c0_9 = arith.constant 0 : index
    %c0_10 = arith.constant 0 : index
    %7 = vector.load %arg5[%c1, %c0_9, %c0_10] : memref<9x12x128xbf16, #tpu.memory_space<vmem>>, vector<1x12x128xbf16>
    %8 = vector.shape_cast %7 : vector<1x12x128xbf16> to vector<12x128xbf16>
    %cst_11 = arith.constant dense<0.000000e+00> : vector<64x128xf32>
    %9 = tpu.matmul %6, %8, %cst_11 {dimension_numbers = #tpu.dot_dimension_numbers<[1], [0], [0], [1], [0, 0, 1, 1], [], []>} : vector<64x12xbf16>, vector<12x128xbf16>, vector<64x128xf32> -> vector<64x128xf32>
    %10 = arith.addf %4, %9 : vector<64x128xf32>
    %c0_12 = arith.constant 0 : index
    %c0_13 = arith.constant 0 : index
    %c16 = arith.constant 16 : index
    %c0_14 = arith.constant 0 : index
    %11 = vector.load %arg2[%c0_12, %c0_13, %c16, %c0_14] : memref<1x1x80x12xbf16, #tpu.memory_space<vmem>>, vector<1x1x64x12xbf16>
    %12 = vector.shape_cast %11 : vector<1x1x64x12xbf16> to vector<64x12xbf16>
    %c2 = arith.constant 2 : index
    %c0_15 = arith.constant 0 : index
    %c0_16 = arith.constant 0 : index
    %13 = vector.load %arg5[%c2, %c0_15, %c0_16] : memref<9x12x128xbf16, #tpu.memory_space<vmem>>, vector<1x12x128xbf16>
    %14 = vector.shape_cast %13 : vector<1x12x128xbf16> to vector<12x128xbf16>
    %cst_17 = arith.constant dense<0.000000e+00> : vector<64x128xf32>
    %15 = tpu.matmul %12, %14, %cst_17 {dimension_numbers = #tpu.dot_dimension_numbers<[1], [0], [0], [1], [0, 0, 1, 1], [], []>} : vector<64x12xbf16>, vector<12x128xbf16>, vector<64x128xf32> -> vector<64x128xf32>
    %16 = arith.addf %10, %15 : vector<64x128xf32>
    %c0_18 = arith.constant 0 : index
    %c0_19 = arith.constant 0 : index
    %c0_20 = arith.constant 0 : index
    %c0_21 = arith.constant 0 : index
    %17 = vector.load %arg3[%c0_18, %c0_19, %c0_20, %c0_21] : memref<1x1x80x12xbf16, #tpu.memory_space<vmem>>, vector<1x1x64x12xbf16>
    %18 = vector.shape_cast %17 : vector<1x1x64x12xbf16> to vector<64x12xbf16>
    %c3 = arith.constant 3 : index
    %c0_22 = arith.constant 0 : index
    %c0_23 = arith.constant 0 : index
    %19 = vector.load %arg5[%c3, %c0_22, %c0_23] : memref<9x12x128xbf16, #tpu.memory_space<vmem>>, vector<1x12x128xbf16>
    %20 = vector.shape_cast %19 : vector<1x12x128xbf16> to vector<12x128xbf16>
    %cst_24 = arith.constant dense<0.000000e+00> : vector<64x128xf32>
    %21 = tpu.matmul %18, %20, %cst_24 {dimension_numbers = #tpu.dot_dimension_numbers<[1], [0], [0], [1], [0, 0, 1, 1], [], []>} : vector<64x12xbf16>, vector<12x128xbf16>, vector<64x128xf32> -> vector<64x128xf32>
    %22 = arith.addf %16, %21 : vector<64x128xf32>
    %c0_25 = arith.constant 0 : index
    %c0_26 = arith.constant 0 : index
    %c8_27 = arith.constant 8 : index
    %c0_28 = arith.constant 0 : index
    %23 = vector.load %arg3[%c0_25, %c0_26, %c8_27, %c0_28] : memref<1x1x80x12xbf16, #tpu.memory_space<vmem>>, vector<1x1x64x12xbf16>
    %24 = vector.shape_cast %23 : vector<1x1x64x12xbf16> to vector<64x12xbf16>
    %c4 = arith.constant 4 : index
    %c0_29 = arith.constant 0 : index
    %c0_30 = arith.constant 0 : index
    %25 = vector.load %arg5[%c4, %c0_29, %c0_30] : memref<9x12x128xbf16, #tpu.memory_space<vmem>>, vector<1x12x128xbf16>
    %26 = vector.shape_cast %25 : vector<1x12x128xbf16> to vector<12x128xbf16>
    %cst_31 = arith.constant dense<0.000000e+00> : vector<64x128xf32>
    %27 = tpu.matmul %24, %26, %cst_31 {dimension_numbers = #tpu.dot_dimension_numbers<[1], [0], [0], [1], [0, 0, 1, 1], [], []>} : vector<64x12xbf16>, vector<12x128xbf16>, vector<64x128xf32> -> vector<64x128xf32>
    %28 = arith.addf %22, %27 : vector<64x128xf32>
    %c0_32 = arith.constant 0 : index
    %c0_33 = arith.constant 0 : index
    %c16_34 = arith.constant 16 : index
    %c0_35 = arith.constant 0 : index
    %29 = vector.load %arg3[%c0_32, %c0_33, %c16_34, %c0_35] : memref<1x1x80x12xbf16, #tpu.memory_space<vmem>>, vector<1x1x64x12xbf16>
    %30 = vector.shape_cast %29 : vector<1x1x64x12xbf16> to vector<64x12xbf16>
    %c5 = arith.constant 5 : index
    %c0_36 = arith.constant 0 : index
    %c0_37 = arith.constant 0 : index
    %31 = vector.load %arg5[%c5, %c0_36, %c0_37] : memref<9x12x128xbf16, #tpu.memory_space<vmem>>, vector<1x12x128xbf16>
    %32 = vector.shape_cast %31 : vector<1x12x128xbf16> to vector<12x128xbf16>
    %cst_38 = arith.constant dense<0.000000e+00> : vector<64x128xf32>
    %33 = tpu.matmul %30, %32, %cst_38 {dimension_numbers = #tpu.dot_dimension_numbers<[1], [0], [0], [1], [0, 0, 1, 1], [], []>} : vector<64x12xbf16>, vector<12x128xbf16>, vector<64x128xf32> -> vector<64x128xf32>
    %34 = arith.addf %28, %33 : vector<64x128xf32>
    %c0_39 = arith.constant 0 : index
    %c0_40 = arith.constant 0 : index
    %c0_41 = arith.constant 0 : index
    %c0_42 = arith.constant 0 : index
    %35 = vector.load %arg4[%c0_39, %c0_40, %c0_41, %c0_42] : memref<1x1x80x12xbf16, #tpu.memory_space<vmem>>, vector<1x1x64x12xbf16>
    %36 = vector.shape_cast %35 : vector<1x1x64x12xbf16> to vector<64x12xbf16>
    %c6 = arith.constant 6 : index
    %c0_43 = arith.constant 0 : index
    %c0_44 = arith.constant 0 : index
    %37 = vector.load %arg5[%c6, %c0_43, %c0_44] : memref<9x12x128xbf16, #tpu.memory_space<vmem>>, vector<1x12x128xbf16>
    %38 = vector.shape_cast %37 : vector<1x12x128xbf16> to vector<12x128xbf16>
    %cst_45 = arith.constant dense<0.000000e+00> : vector<64x128xf32>
    %39 = tpu.matmul %36, %38, %cst_45 {dimension_numbers = #tpu.dot_dimension_numbers<[1], [0], [0], [1], [0, 0, 1, 1], [], []>} : vector<64x12xbf16>, vector<12x128xbf16>, vector<64x128xf32> -> vector<64x128xf32>
    %40 = arith.addf %34, %39 : vector<64x128xf32>
    %c0_46 = arith.constant 0 : index
    %c0_47 = arith.constant 0 : index
    %c8_48 = arith.constant 8 : index
    %c0_49 = arith.constant 0 : index
    %41 = vector.load %arg4[%c0_46, %c0_47, %c8_48, %c0_49] : memref<1x1x80x12xbf16, #tpu.memory_space<vmem>>, vector<1x1x64x12xbf16>
    %42 = vector.shape_cast %41 : vector<1x1x64x12xbf16> to vector<64x12xbf16>
    %c7 = arith.constant 7 : index
    %c0_50 = arith.constant 0 : index
    %c0_51 = arith.constant 0 : index
    %43 = vector.load %arg5[%c7, %c0_50, %c0_51] : memref<9x12x128xbf16, #tpu.memory_space<vmem>>, vector<1x12x128xbf16>
    %44 = vector.shape_cast %43 : vector<1x12x128xbf16> to vector<12x128xbf16>
    %cst_52 = arith.constant dense<0.000000e+00> : vector<64x128xf32>
    %45 = tpu.matmul %42, %44, %cst_52 {dimension_numbers = #tpu.dot_dimension_numbers<[1], [0], [0], [1], [0, 0, 1, 1], [], []>} : vector<64x12xbf16>, vector<12x128xbf16>, vector<64x128xf32> -> vector<64x128xf32>
    %46 = arith.addf %40, %45 : vector<64x128xf32>
    %c0_53 = arith.constant 0 : index
    %c0_54 = arith.constant 0 : index
    %c16_55 = arith.constant 16 : index
    %c0_56 = arith.constant 0 : index
    %47 = vector.load %arg4[%c0_53, %c0_54, %c16_55, %c0_56] : memref<1x1x80x12xbf16, #tpu.memory_space<vmem>>, vector<1x1x64x12xbf16>
    %48 = vector.shape_cast %47 : vector<1x1x64x12xbf16> to vector<64x12xbf16>
    %c8_57 = arith.constant 8 : index
    %c0_58 = arith.constant 0 : index
    %c0_59 = arith.constant 0 : index
    %49 = vector.load %arg5[%c8_57, %c0_58, %c0_59] : memref<9x12x128xbf16, #tpu.memory_space<vmem>>, vector<1x12x128xbf16>
    %50 = vector.shape_cast %49 : vector<1x12x128xbf16> to vector<12x128xbf16>
    %cst_60 = arith.constant dense<0.000000e+00> : vector<64x128xf32>
    %51 = tpu.matmul %48, %50, %cst_60 {dimension_numbers = #tpu.dot_dimension_numbers<[1], [0], [0], [1], [0, 0, 1, 1], [], []>} : vector<64x12xbf16>, vector<12x128xbf16>, vector<64x128xf32> -> vector<64x128xf32>
    %52 = arith.addf %46, %51 : vector<64x128xf32>
    %c0_61 = arith.constant 0 : index
    %c0_62 = arith.constant 0 : index
    %53 = vector.load %arg6[%c0_61, %c0_62] : memref<1x128xf32, #tpu.memory_space<vmem>>, vector<1x128xf32>
    %54 = vector.broadcast %53 : vector<1x128xf32> to vector<64x128xf32>
    %55 = arith.addf %52, %54 : vector<64x128xf32>
    %c0_63 = arith.constant 0 : index
    %c0_64 = arith.constant 0 : index
    %c0_65 = arith.constant 0 : index
    %c0_66 = arith.constant 0 : index
    %56 = vector.load %arg7[%c0_63, %c0_64, %c0_65, %c0_66] : memref<1x1x64x128xf32, #tpu.memory_space<vmem>>, vector<1x1x64x128xf32>
    %57 = vector.shape_cast %56 : vector<1x1x64x128xf32> to vector<64x128xf32>
    %58 = vector.shape_cast %55 : vector<64x128xf32> to vector<1x1x64x128xf32>
    tpu.vector_store %arg7[%c0_63, %c0_64, %c0_65, %c0_66], %58 {strides = array<i32>} : memref<1x1x64x128xf32, #tpu.memory_space<vmem>>, vector<1x1x64x128xf32>,
    %cst_67 = arith.constant dense<0.000000e+00> : vector<128xf32>
    %59 = vector.multi_reduction <add>, %55, %cst_67 [0] : vector<64x128xf32> to vector<128xf32>
    %60 = vector.shape_cast %59 : vector<128xf32> to vector<1x128xf32>
    %61 = arith.mulf %55, %55 : vector<64x128xf32>
    %cst_68 = arith.constant dense<0.000000e+00> : vector<128xf32>
    %62 = vector.multi_reduction <add>, %61, %cst_68 [0] : vector<64x128xf32> to vector<128xf32>
    %63 = vector.shape_cast %62 : vector<128xf32> to vector<1x128xf32>
    %c0_i32 = arith.constant 0 : i32
    %64 = arith.cmpi eq, %arg1, %c0_i32 : i32
    %65 = arith.extui %64 : i1 to i32
    %c0_i32_69 = arith.constant 0 : i32
    %66 = arith.cmpi ne, %65, %c0_i32_69 : i32
    scf.if %66 {
      %c0_72 = arith.constant 0 : index
      %c0_73 = arith.constant 0 : index
      %c0_74 = arith.constant 0 : index
      %70 = vector.load %arg8[%c0_72, %c0_73, %c0_74] : memref<1x1x128xf32, #tpu.memory_space<vmem>>, vector<1x1x128xf32>
      %71 = vector.shape_cast %70 : vector<1x1x128xf32> to vector<1x128xf32>
      %72 = vector.shape_cast %60 : vector<1x128xf32> to vector<1x1x128xf32>
      tpu.vector_store %arg8[%c0_72, %c0_73, %c0_74], %72 {strides = array<i32>} : memref<1x1x128xf32, #tpu.memory_space<vmem>>, vector<1x1x128xf32>,
      %c0_75 = arith.constant 0 : index
      %c0_76 = arith.constant 0 : index
      %c0_77 = arith.constant 0 : index
      %73 = vector.load %arg9[%c0_75, %c0_76, %c0_77] : memref<1x1x128xf32, #tpu.memory_space<vmem>>, vector<1x1x128xf32>
      %74 = vector.shape_cast %73 : vector<1x1x128xf32> to vector<1x128xf32>
      %75 = vector.shape_cast %63 : vector<1x128xf32> to vector<1x1x128xf32>
      tpu.vector_store %arg9[%c0_75, %c0_76, %c0_77], %75 {strides = array<i32>} : memref<1x1x128xf32, #tpu.memory_space<vmem>>, vector<1x1x128xf32>,
    } else {
    }
    %c0_i32_70 = arith.constant 0 : i32
    %67 = arith.cmpi sgt, %arg1, %c0_i32_70 : i32
    %68 = arith.extui %67 : i1 to i32
    %c0_i32_71 = arith.constant 0 : i32
    %69 = arith.cmpi ne, %68, %c0_i32_71 : i32
    scf.if %69 {
      %c0_72 = arith.constant 0 : index
      %c0_73 = arith.constant 0 : index
      %c0_74 = arith.constant 0 : index
      %70 = vector.load %arg8[%c0_72, %c0_73, %c0_74] : memref<1x1x128xf32, #tpu.memory_space<vmem>>, vector<1x1x128xf32>
      %71 = vector.shape_cast %70 : vector<1x1x128xf32> to vector<1x128xf32>
      %72 = arith.addf %71, %60 : vector<1x128xf32>
      %c0_75 = arith.constant 0 : index
      %c0_76 = arith.constant 0 : index
      %c0_77 = arith.constant 0 : index
      %73 = vector.load %arg8[%c0_75, %c0_76, %c0_77] : memref<1x1x128xf32, #tpu.memory_space<vmem>>, vector<1x1x128xf32>
      %74 = vector.shape_cast %73 : vector<1x1x128xf32> to vector<1x128xf32>
      %75 = vector.shape_cast %72 : vector<1x128xf32> to vector<1x1x128xf32>
      tpu.vector_store %arg8[%c0_75, %c0_76, %c0_77], %75 {strides = array<i32>} : memref<1x1x128xf32, #tpu.memory_space<vmem>>, vector<1x1x128xf32>,
      %c0_78 = arith.constant 0 : index
      %c0_79 = arith.constant 0 : index
      %c0_80 = arith.constant 0 : index
      %76 = vector.load %arg9[%c0_78, %c0_79, %c0_80] : memref<1x1x128xf32, #tpu.memory_space<vmem>>, vector<1x1x128xf32>
      %77 = vector.shape_cast %76 : vector<1x1x128xf32> to vector<1x128xf32>
      %78 = arith.addf %77, %63 : vector<1x128xf32>
      %c0_81 = arith.constant 0 : index
      %c0_82 = arith.constant 0 : index
      %c0_83 = arith.constant 0 : index
      %79 = vector.load %arg9[%c0_81, %c0_82, %c0_83] : memref<1x1x128xf32, #tpu.memory_space<vmem>>, vector<1x1x128xf32>
      %80 = vector.shape_cast %79 : vector<1x1x128xf32> to vector<1x128xf32>
      %81 = vector.shape_cast %78 : vector<1x128xf32> to vector<1x1x128xf32>
      tpu.vector_store %arg9[%c0_81, %c0_82, %c0_83], %81 {strides = array<i32>} : memref<1x1x128xf32, #tpu.memory_space<vmem>>, vector<1x1x128xf32>,
    } else {
    }
    return
  }
  func.func @transform_0(%arg0: i32, %arg1: i32) -> (i32, i32, i32, i32) {
    %c0_i32 = arith.constant 0 : i32
    %0 = arith.addi %arg1, %c0_i32 : i32
    %c0_i32_0 = arith.constant 0 : i32
    %c0_i32_1 = arith.constant 0 : i32
    %c0_i32_2 = arith.constant 0 : i32
    return %arg0, %0, %c0_i32_0, %c0_i32_1 : i32, i32, i32, i32
  }
  func.func @transform_1(%arg0: i32, %arg1: i32) -> (i32, i32, i32, i32) {
    %c1_i32 = arith.constant 1 : i32
    %0 = arith.addi %arg1, %c1_i32 : i32
    %c0_i32 = arith.constant 0 : i32
    %c0_i32_0 = arith.constant 0 : i32
    %c0_i32_1 = arith.constant 0 : i32
    return %arg0, %0, %c0_i32, %c0_i32_0 : i32, i32, i32, i32
  }
  func.func @transform_2(%arg0: i32, %arg1: i32) -> (i32, i32, i32, i32) {
    %c2_i32 = arith.constant 2 : i32
    %0 = arith.addi %arg1, %c2_i32 : i32
    %c0_i32 = arith.constant 0 : i32
    %c0_i32_0 = arith.constant 0 : i32
    %c0_i32_1 = arith.constant 0 : i32
    return %arg0, %0, %c0_i32, %c0_i32_0 : i32, i32, i32, i32
  }
  func.func @transform_3(%arg0: i32, %arg1: i32) -> (i32, i32, i32) {
    %c0_i32 = arith.constant 0 : i32
    %c0_i32_0 = arith.constant 0 : i32
    %c0_i32_1 = arith.constant 0 : i32
    %c0_i32_2 = arith.constant 0 : i32
    return %c0_i32, %c0_i32_0, %c0_i32_1 : i32, i32, i32
  }
  func.func @transform_4(%arg0: i32, %arg1: i32) -> (i32, i32) {
    %c0_i32 = arith.constant 0 : i32
    %c0_i32_0 = arith.constant 0 : i32
    %c0_i32_1 = arith.constant 0 : i32
    return %c0_i32, %c0_i32_0 : i32, i32
  }
  func.func @transform_5(%arg0: i32, %arg1: i32) -> (i32, i32, i32, i32) {
    %c0_i32 = arith.constant 0 : i32
    %c0_i32_0 = arith.constant 0 : i32
    %c0_i32_1 = arith.constant 0 : i32
    return %arg0, %arg1, %c0_i32, %c0_i32_0 : i32, i32, i32, i32
  }
  func.func @transform_6(%arg0: i32, %arg1: i32) -> (i32, i32, i32) {
    %c0_i32 = arith.constant 0 : i32
    %c0_i32_0 = arith.constant 0 : i32
    %c0_i32_1 = arith.constant 0 : i32
    return %arg0, %c0_i32, %c0_i32_0 : i32, i32, i32
  }
  func.func @transform_7(%arg0: i32, %arg1: i32) -> (i32, i32, i32) {
    %c0_i32 = arith.constant 0 : i32
    %c0_i32_0 = arith.constant 0 : i32
    %c0_i32_1 = arith.constant 0 : i32
    return %arg0, %c0_i32, %c0_i32_0 : i32, i32, i32
  }
}

module attributes {stable_mosaic.version = 11 : i64} {
  func.func @_conv3x3_gnstats_kernel(%arg0: i32, %arg1: i32, %arg2: memref<1x1x80x24xbf16, #tpu.memory_space<vmem>>, %arg3: memref<1x1x80x24xbf16, #tpu.memory_space<vmem>>, %arg4: memref<1x1x80x24xbf16, #tpu.memory_space<vmem>>, %arg5: memref<9x24x128xbf16, #tpu.memory_space<vmem>>, %arg6: memref<1x128xf32, #tpu.memory_space<vmem>>, %arg7: memref<1x1x64x128xf32, #tpu.memory_space<vmem>>, %arg8: memref<1x1x128xf32, #tpu.memory_space<vmem>>, %arg9: memref<1x1x128xf32, #tpu.memory_space<vmem>>) attributes {dimension_semantics = [#tpu.dimension_semantics<parallel>, #tpu.dimension_semantics<arbitrary>], iteration_bounds = array<i64: 2, 4>, scalar_prefetch = 0 : i64, scratch_operands = 0 : i64, tpu.core_type = #tpu.core_type<tc>, window_params = [{transform_indices = @transform_0, window_bounds = array<i64: 1, 1, 80, 24>}, {transform_indices = @transform_1, window_bounds = array<i64: 1, 1, 80, 24>}, {transform_indices = @transform_2, window_bounds = array<i64: 1, 1, 80, 24>}, {pipeline_mode = #tpu.pipeline_mode<synchronous>, transform_indices = @transform_3, window_bounds = array<i64: 9, 24, 128>}, {pipeline_mode = #tpu.pipeline_mode<synchronous>, transform_indices = @transform_4, window_bounds = array<i64: 1, 128>}, {transform_indices = @transform_5, window_bounds = array<i64: 1, 1, 64, 128>}, {transform_indices = @transform_6, window_bounds = array<i64: 1, 1, 128>}, {transform_indices = @transform_7, window_bounds = array<i64: 1, 1, 128>}]} {
    %c0 = arith.constant 0 : index
    %c0_0 = arith.constant 0 : index
    %c0_1 = arith.constant 0 : index
    %c0_2 = arith.constant 0 : index
    %0 = vector.load %arg2[%c0, %c0_0, %c0_1, %c0_2] : memref<1x1x80x24xbf16, #tpu.memory_space<vmem>>, vector<1x1x64x24xbf16>
    %1 = vector.shape_cast %0 : vector<1x1x64x24xbf16> to vector<64x24xbf16>
    %c0_3 = arith.constant 0 : index
    %c0_4 = arith.constant 0 : index
    %c0_5 = arith.constant 0 : index
    %2 = vector.load %arg5[%c0_3, %c0_4, %c0_5] : memref<9x24x128xbf16, #tpu.memory_space<vmem>>, vector<1x24x128xbf16>
    %3 = vector.shape_cast %2 : vector<1x24x128xbf16> to vector<24x128xbf16>
    %cst = arith.constant dense<0.000000e+00> : vector<64x128xf32>
    %4 = tpu.matmul %1, %3, %cst {dimension_numbers = #tpu.dot_dimension_numbers<[1], [0], [0], [1], [0, 0, 1, 1], [], []>} : vector<64x24xbf16>, vector<24x128xbf16>, vector<64x128xf32> -> vector<64x128xf32>
    %c0_6 = arith.constant 0 : index
    %c0_7 = arith.constant 0 : index
    %c8 = arith.constant 8 : index
    %c0_8 = arith.constant 0 : index
    %5 = vector.load %arg2[%c0_6, %c0_7, %c8, %c0_8] : memref<1x1x80x24xbf16, #tpu.memory_space<vmem>>, vector<1x1x64x24xbf16>
    %6 = vector.shape_cast %5 : vector<1x1x64x24xbf16> to vector<64x24xbf16>
    %c1 = arith.constant 1 : index
    %c0_9 = arith.constant 0 : index
    %c0_10 = arith.constant 0 : index
    %7 = vector.load %arg5[%c1, %c0_9, %c0_10] : memref<9x24x128xbf16, #tpu.memory_space<vmem>>, vector<1x24x128xbf16>
    %8 = vector.shape_cast %7 : vector<1x24x128xbf16> to vector<24x128xbf16>
    %cst_11 = arith.constant dense<0.000000e+00> : vector<64x128xf32>
    %9 = tpu.matmul %6, %8, %cst_11 {dimension_numbers = #tpu.dot_dimension_numbers<[1], [0], [0], [1], [0, 0, 1, 1], [], []>} : vector<64x24xbf16>, vector<24x128xbf16>, vector<64x128xf32> -> vector<64x128xf32>
    %10 = arith.addf %4, %9 : vector<64x128xf32>
    %c0_12 = arith.constant 0 : index
    %c0_13 = arith.constant 0 : index
    %c16 = arith.constant 16 : index
    %c0_14 = arith.constant 0 : index
    %11 = vector.load %arg2[%c0_12, %c0_13, %c16, %c0_14] : memref<1x1x80x24xbf16, #tpu.memory_space<vmem>>, vector<1x1x64x24xbf16>
    %12 = vector.shape_cast %11 : vector<1x1x64x24xbf16> to vector<64x24xbf16>
    %c2 = arith.constant 2 : index
    %c0_15 = arith.constant 0 : index
    %c0_16 = arith.constant 0 : index
    %13 = vector.load %arg5[%c2, %c0_15, %c0_16] : memref<9x24x128xbf16, #tpu.memory_space<vmem>>, vector<1x24x128xbf16>
    %14 = vector.shape_cast %13 : vector<1x24x128xbf16> to vector<24x128xbf16>
    %cst_17 = arith.constant dense<0.000000e+00> : vector<64x128xf32>
    %15 = tpu.matmul %12, %14, %cst_17 {dimension_numbers = #tpu.dot_dimension_numbers<[1], [0], [0], [1], [0, 0, 1, 1], [], []>} : vector<64x24xbf16>, vector<24x128xbf16>, vector<64x128xf32> -> vector<64x128xf32>
    %16 = arith.addf %10, %15 : vector<64x128xf32>
    %c0_18 = arith.constant 0 : index
    %c0_19 = arith.constant 0 : index
    %c0_20 = arith.constant 0 : index
    %c0_21 = arith.constant 0 : index
    %17 = vector.load %arg3[%c0_18, %c0_19, %c0_20, %c0_21] : memref<1x1x80x24xbf16, #tpu.memory_space<vmem>>, vector<1x1x64x24xbf16>
    %18 = vector.shape_cast %17 : vector<1x1x64x24xbf16> to vector<64x24xbf16>
    %c3 = arith.constant 3 : index
    %c0_22 = arith.constant 0 : index
    %c0_23 = arith.constant 0 : index
    %19 = vector.load %arg5[%c3, %c0_22, %c0_23] : memref<9x24x128xbf16, #tpu.memory_space<vmem>>, vector<1x24x128xbf16>
    %20 = vector.shape_cast %19 : vector<1x24x128xbf16> to vector<24x128xbf16>
    %cst_24 = arith.constant dense<0.000000e+00> : vector<64x128xf32>
    %21 = tpu.matmul %18, %20, %cst_24 {dimension_numbers = #tpu.dot_dimension_numbers<[1], [0], [0], [1], [0, 0, 1, 1], [], []>} : vector<64x24xbf16>, vector<24x128xbf16>, vector<64x128xf32> -> vector<64x128xf32>
    %22 = arith.addf %16, %21 : vector<64x128xf32>
    %c0_25 = arith.constant 0 : index
    %c0_26 = arith.constant 0 : index
    %c8_27 = arith.constant 8 : index
    %c0_28 = arith.constant 0 : index
    %23 = vector.load %arg3[%c0_25, %c0_26, %c8_27, %c0_28] : memref<1x1x80x24xbf16, #tpu.memory_space<vmem>>, vector<1x1x64x24xbf16>
    %24 = vector.shape_cast %23 : vector<1x1x64x24xbf16> to vector<64x24xbf16>
    %c4 = arith.constant 4 : index
    %c0_29 = arith.constant 0 : index
    %c0_30 = arith.constant 0 : index
    %25 = vector.load %arg5[%c4, %c0_29, %c0_30] : memref<9x24x128xbf16, #tpu.memory_space<vmem>>, vector<1x24x128xbf16>
    %26 = vector.shape_cast %25 : vector<1x24x128xbf16> to vector<24x128xbf16>
    %cst_31 = arith.constant dense<0.000000e+00> : vector<64x128xf32>
    %27 = tpu.matmul %24, %26, %cst_31 {dimension_numbers = #tpu.dot_dimension_numbers<[1], [0], [0], [1], [0, 0, 1, 1], [], []>} : vector<64x24xbf16>, vector<24x128xbf16>, vector<64x128xf32> -> vector<64x128xf32>
    %28 = arith.addf %22, %27 : vector<64x128xf32>
    %c0_32 = arith.constant 0 : index
    %c0_33 = arith.constant 0 : index
    %c16_34 = arith.constant 16 : index
    %c0_35 = arith.constant 0 : index
    %29 = vector.load %arg3[%c0_32, %c0_33, %c16_34, %c0_35] : memref<1x1x80x24xbf16, #tpu.memory_space<vmem>>, vector<1x1x64x24xbf16>
    %30 = vector.shape_cast %29 : vector<1x1x64x24xbf16> to vector<64x24xbf16>
    %c5 = arith.constant 5 : index
    %c0_36 = arith.constant 0 : index
    %c0_37 = arith.constant 0 : index
    %31 = vector.load %arg5[%c5, %c0_36, %c0_37] : memref<9x24x128xbf16, #tpu.memory_space<vmem>>, vector<1x24x128xbf16>
    %32 = vector.shape_cast %31 : vector<1x24x128xbf16> to vector<24x128xbf16>
    %cst_38 = arith.constant dense<0.000000e+00> : vector<64x128xf32>
    %33 = tpu.matmul %30, %32, %cst_38 {dimension_numbers = #tpu.dot_dimension_numbers<[1], [0], [0], [1], [0, 0, 1, 1], [], []>} : vector<64x24xbf16>, vector<24x128xbf16>, vector<64x128xf32> -> vector<64x128xf32>
    %34 = arith.addf %28, %33 : vector<64x128xf32>
    %c0_39 = arith.constant 0 : index
    %c0_40 = arith.constant 0 : index
    %c0_41 = arith.constant 0 : index
    %c0_42 = arith.constant 0 : index
    %35 = vector.load %arg4[%c0_39, %c0_40, %c0_41, %c0_42] : memref<1x1x80x24xbf16, #tpu.memory_space<vmem>>, vector<1x1x64x24xbf16>
    %36 = vector.shape_cast %35 : vector<1x1x64x24xbf16> to vector<64x24xbf16>
    %c6 = arith.constant 6 : index
    %c0_43 = arith.constant 0 : index
    %c0_44 = arith.constant 0 : index
    %37 = vector.load %arg5[%c6, %c0_43, %c0_44] : memref<9x24x128xbf16, #tpu.memory_space<vmem>>, vector<1x24x128xbf16>
    %38 = vector.shape_cast %37 : vector<1x24x128xbf16> to vector<24x128xbf16>
    %cst_45 = arith.constant dense<0.000000e+00> : vector<64x128xf32>
    %39 = tpu.matmul %36, %38, %cst_45 {dimension_numbers = #tpu.dot_dimension_numbers<[1], [0], [0], [1], [0, 0, 1, 1], [], []>} : vector<64x24xbf16>, vector<24x128xbf16>, vector<64x128xf32> -> vector<64x128xf32>
    %40 = arith.addf %34, %39 : vector<64x128xf32>
    %c0_46 = arith.constant 0 : index
    %c0_47 = arith.constant 0 : index
    %c8_48 = arith.constant 8 : index
    %c0_49 = arith.constant 0 : index
    %41 = vector.load %arg4[%c0_46, %c0_47, %c8_48, %c0_49] : memref<1x1x80x24xbf16, #tpu.memory_space<vmem>>, vector<1x1x64x24xbf16>
    %42 = vector.shape_cast %41 : vector<1x1x64x24xbf16> to vector<64x24xbf16>
    %c7 = arith.constant 7 : index
    %c0_50 = arith.constant 0 : index
    %c0_51 = arith.constant 0 : index
    %43 = vector.load %arg5[%c7, %c0_50, %c0_51] : memref<9x24x128xbf16, #tpu.memory_space<vmem>>, vector<1x24x128xbf16>
    %44 = vector.shape_cast %43 : vector<1x24x128xbf16> to vector<24x128xbf16>
    %cst_52 = arith.constant dense<0.000000e+00> : vector<64x128xf32>
    %45 = tpu.matmul %42, %44, %cst_52 {dimension_numbers = #tpu.dot_dimension_numbers<[1], [0], [0], [1], [0, 0, 1, 1], [], []>} : vector<64x24xbf16>, vector<24x128xbf16>, vector<64x128xf32> -> vector<64x128xf32>
    %46 = arith.addf %40, %45 : vector<64x128xf32>
    %c0_53 = arith.constant 0 : index
    %c0_54 = arith.constant 0 : index
    %c16_55 = arith.constant 16 : index
    %c0_56 = arith.constant 0 : index
    %47 = vector.load %arg4[%c0_53, %c0_54, %c16_55, %c0_56] : memref<1x1x80x24xbf16, #tpu.memory_space<vmem>>, vector<1x1x64x24xbf16>
    %48 = vector.shape_cast %47 : vector<1x1x64x24xbf16> to vector<64x24xbf16>
    %c8_57 = arith.constant 8 : index
    %c0_58 = arith.constant 0 : index
    %c0_59 = arith.constant 0 : index
    %49 = vector.load %arg5[%c8_57, %c0_58, %c0_59] : memref<9x24x128xbf16, #tpu.memory_space<vmem>>, vector<1x24x128xbf16>
    %50 = vector.shape_cast %49 : vector<1x24x128xbf16> to vector<24x128xbf16>
    %cst_60 = arith.constant dense<0.000000e+00> : vector<64x128xf32>
    %51 = tpu.matmul %48, %50, %cst_60 {dimension_numbers = #tpu.dot_dimension_numbers<[1], [0], [0], [1], [0, 0, 1, 1], [], []>} : vector<64x24xbf16>, vector<24x128xbf16>, vector<64x128xf32> -> vector<64x128xf32>
    %52 = arith.addf %46, %51 : vector<64x128xf32>
    %c0_61 = arith.constant 0 : index
    %c0_62 = arith.constant 0 : index
    %53 = vector.load %arg6[%c0_61, %c0_62] : memref<1x128xf32, #tpu.memory_space<vmem>>, vector<1x128xf32>
    %54 = vector.broadcast %53 : vector<1x128xf32> to vector<64x128xf32>
    %55 = arith.addf %52, %54 : vector<64x128xf32>
    %c0_63 = arith.constant 0 : index
    %c0_64 = arith.constant 0 : index
    %c0_65 = arith.constant 0 : index
    %c0_66 = arith.constant 0 : index
    %56 = vector.load %arg7[%c0_63, %c0_64, %c0_65, %c0_66] : memref<1x1x64x128xf32, #tpu.memory_space<vmem>>, vector<1x1x64x128xf32>
    %57 = vector.shape_cast %56 : vector<1x1x64x128xf32> to vector<64x128xf32>
    %58 = vector.shape_cast %55 : vector<64x128xf32> to vector<1x1x64x128xf32>
    tpu.vector_store %arg7[%c0_63, %c0_64, %c0_65, %c0_66], %58 {strides = array<i32>} : memref<1x1x64x128xf32, #tpu.memory_space<vmem>>, vector<1x1x64x128xf32>,
    %cst_67 = arith.constant dense<0.000000e+00> : vector<128xf32>
    %59 = vector.multi_reduction <add>, %55, %cst_67 [0] : vector<64x128xf32> to vector<128xf32>
    %60 = vector.shape_cast %59 : vector<128xf32> to vector<1x128xf32>
    %61 = arith.mulf %55, %55 : vector<64x128xf32>
    %cst_68 = arith.constant dense<0.000000e+00> : vector<128xf32>
    %62 = vector.multi_reduction <add>, %61, %cst_68 [0] : vector<64x128xf32> to vector<128xf32>
    %63 = vector.shape_cast %62 : vector<128xf32> to vector<1x128xf32>
    %c0_i32 = arith.constant 0 : i32
    %64 = arith.cmpi eq, %arg1, %c0_i32 : i32
    %65 = arith.extui %64 : i1 to i32
    %c0_i32_69 = arith.constant 0 : i32
    %66 = arith.cmpi ne, %65, %c0_i32_69 : i32
    scf.if %66 {
      %c0_72 = arith.constant 0 : index
      %c0_73 = arith.constant 0 : index
      %c0_74 = arith.constant 0 : index
      %70 = vector.load %arg8[%c0_72, %c0_73, %c0_74] : memref<1x1x128xf32, #tpu.memory_space<vmem>>, vector<1x1x128xf32>
      %71 = vector.shape_cast %70 : vector<1x1x128xf32> to vector<1x128xf32>
      %72 = vector.shape_cast %60 : vector<1x128xf32> to vector<1x1x128xf32>
      tpu.vector_store %arg8[%c0_72, %c0_73, %c0_74], %72 {strides = array<i32>} : memref<1x1x128xf32, #tpu.memory_space<vmem>>, vector<1x1x128xf32>,
      %c0_75 = arith.constant 0 : index
      %c0_76 = arith.constant 0 : index
      %c0_77 = arith.constant 0 : index
      %73 = vector.load %arg9[%c0_75, %c0_76, %c0_77] : memref<1x1x128xf32, #tpu.memory_space<vmem>>, vector<1x1x128xf32>
      %74 = vector.shape_cast %73 : vector<1x1x128xf32> to vector<1x128xf32>
      %75 = vector.shape_cast %63 : vector<1x128xf32> to vector<1x1x128xf32>
      tpu.vector_store %arg9[%c0_75, %c0_76, %c0_77], %75 {strides = array<i32>} : memref<1x1x128xf32, #tpu.memory_space<vmem>>, vector<1x1x128xf32>,
    } else {
    }
    %c0_i32_70 = arith.constant 0 : i32
    %67 = arith.cmpi sgt, %arg1, %c0_i32_70 : i32
    %68 = arith.extui %67 : i1 to i32
    %c0_i32_71 = arith.constant 0 : i32
    %69 = arith.cmpi ne, %68, %c0_i32_71 : i32
    scf.if %69 {
      %c0_72 = arith.constant 0 : index
      %c0_73 = arith.constant 0 : index
      %c0_74 = arith.constant 0 : index
      %70 = vector.load %arg8[%c0_72, %c0_73, %c0_74] : memref<1x1x128xf32, #tpu.memory_space<vmem>>, vector<1x1x128xf32>
      %71 = vector.shape_cast %70 : vector<1x1x128xf32> to vector<1x128xf32>
      %72 = arith.addf %71, %60 : vector<1x128xf32>
      %c0_75 = arith.constant 0 : index
      %c0_76 = arith.constant 0 : index
      %c0_77 = arith.constant 0 : index
      %73 = vector.load %arg8[%c0_75, %c0_76, %c0_77] : memref<1x1x128xf32, #tpu.memory_space<vmem>>, vector<1x1x128xf32>
      %74 = vector.shape_cast %73 : vector<1x1x128xf32> to vector<1x128xf32>
      %75 = vector.shape_cast %72 : vector<1x128xf32> to vector<1x1x128xf32>
      tpu.vector_store %arg8[%c0_75, %c0_76, %c0_77], %75 {strides = array<i32>} : memref<1x1x128xf32, #tpu.memory_space<vmem>>, vector<1x1x128xf32>,
      %c0_78 = arith.constant 0 : index
      %c0_79 = arith.constant 0 : index
      %c0_80 = arith.constant 0 : index
      %76 = vector.load %arg9[%c0_78, %c0_79, %c0_80] : memref<1x1x128xf32, #tpu.memory_space<vmem>>, vector<1x1x128xf32>
      %77 = vector.shape_cast %76 : vector<1x1x128xf32> to vector<1x128xf32>
      %78 = arith.addf %77, %63 : vector<1x128xf32>
      %c0_81 = arith.constant 0 : index
      %c0_82 = arith.constant 0 : index
      %c0_83 = arith.constant 0 : index
      %79 = vector.load %arg9[%c0_81, %c0_82, %c0_83] : memref<1x1x128xf32, #tpu.memory_space<vmem>>, vector<1x1x128xf32>
      %80 = vector.shape_cast %79 : vector<1x1x128xf32> to vector<1x128xf32>
      %81 = vector.shape_cast %78 : vector<1x128xf32> to vector<1x1x128xf32>
      tpu.vector_store %arg9[%c0_81, %c0_82, %c0_83], %81 {strides = array<i32>} : memref<1x1x128xf32, #tpu.memory_space<vmem>>, vector<1x1x128xf32>,
    } else {
    }
    return
  }
  func.func @transform_0(%arg0: i32, %arg1: i32) -> (i32, i32, i32, i32) {
    %c0_i32 = arith.constant 0 : i32
    %0 = arith.addi %arg1, %c0_i32 : i32
    %c0_i32_0 = arith.constant 0 : i32
    %c0_i32_1 = arith.constant 0 : i32
    %c0_i32_2 = arith.constant 0 : i32
    return %arg0, %0, %c0_i32_0, %c0_i32_1 : i32, i32, i32, i32
  }
  func.func @transform_1(%arg0: i32, %arg1: i32) -> (i32, i32, i32, i32) {
    %c1_i32 = arith.constant 1 : i32
    %0 = arith.addi %arg1, %c1_i32 : i32
    %c0_i32 = arith.constant 0 : i32
    %c0_i32_0 = arith.constant 0 : i32
    %c0_i32_1 = arith.constant 0 : i32
    return %arg0, %0, %c0_i32, %c0_i32_0 : i32, i32, i32, i32
  }
  func.func @transform_2(%arg0: i32, %arg1: i32) -> (i32, i32, i32, i32) {
    %c2_i32 = arith.constant 2 : i32
    %0 = arith.addi %arg1, %c2_i32 : i32
    %c0_i32 = arith.constant 0 : i32
    %c0_i32_0 = arith.constant 0 : i32
    %c0_i32_1 = arith.constant 0 : i32
    return %arg0, %0, %c0_i32, %c0_i32_0 : i32, i32, i32, i32
  }
  func.func @transform_3(%arg0: i32, %arg1: i32) -> (i32, i32, i32) {
    %c0_i32 = arith.constant 0 : i32
    %c0_i32_0 = arith.constant 0 : i32
    %c0_i32_1 = arith.constant 0 : i32
    %c0_i32_2 = arith.constant 0 : i32
    return %c0_i32, %c0_i32_0, %c0_i32_1 : i32, i32, i32
  }
  func.func @transform_4(%arg0: i32, %arg1: i32) -> (i32, i32) {
    %c0_i32 = arith.constant 0 : i32
    %c0_i32_0 = arith.constant 0 : i32
    %c0_i32_1 = arith.constant 0 : i32
    return %c0_i32, %c0_i32_0 : i32, i32
  }
  func.func @transform_5(%arg0: i32, %arg1: i32) -> (i32, i32, i32, i32) {
    %c0_i32 = arith.constant 0 : i32
    %c0_i32_0 = arith.constant 0 : i32
    %c0_i32_1 = arith.constant 0 : i32
    return %arg0, %arg1, %c0_i32, %c0_i32_0 : i32, i32, i32, i32
  }
  func.func @transform_6(%arg0: i32, %arg1: i32) -> (i32, i32, i32) {
    %c0_i32 = arith.constant 0 : i32
    %c0_i32_0 = arith.constant 0 : i32
    %c0_i32_1 = arith.constant 0 : i32
    return %arg0, %c0_i32, %c0_i32_0 : i32, i32, i32
  }
  func.func @transform_7(%arg0: i32, %arg1: i32) -> (i32, i32, i32) {
    %c0_i32 = arith.constant 0 : i32
    %c0_i32_0 = arith.constant 0 : i32
    %c0_i32_1 = arith.constant 0 : i32
    return %arg0, %c0_i32, %c0_i32_0 : i32, i32, i32
  }
}

module attributes {stable_mosaic.version = 11 : i64} {
  func.func @_matmul_bias_kernel(%arg0: i32, %arg1: memref<256x4xbf16, #tpu.memory_space<vmem>>, %arg2: memref<4x128xbf16, #tpu.memory_space<vmem>>, %arg3: memref<1x128xf32, #tpu.memory_space<vmem>>, %arg4: memref<256x128xf32, #tpu.memory_space<vmem>>) attributes {dimension_semantics = [#tpu.dimension_semantics<parallel>], iteration_bounds = array<i64: 2>, scalar_prefetch = 0 : i64, scratch_operands = 0 : i64, tpu.core_type = #tpu.core_type<tc>, window_params = [{transform_indices = @transform_0, window_bounds = array<i64: 256, 4>}, {pipeline_mode = #tpu.pipeline_mode<synchronous>, transform_indices = @transform_1, window_bounds = array<i64: 4, 128>}, {pipeline_mode = #tpu.pipeline_mode<synchronous>, transform_indices = @transform_2, window_bounds = array<i64: 1, 128>}, {transform_indices = @transform_3, window_bounds = array<i64: 256, 128>}]} {
    %c0 = arith.constant 0 : index
    %c0_0 = arith.constant 0 : index
    %0 = vector.load %arg1[%c0, %c0_0] : memref<256x4xbf16, #tpu.memory_space<vmem>>, vector<256x4xbf16>
    %c0_1 = arith.constant 0 : index
    %c0_2 = arith.constant 0 : index
    %1 = vector.load %arg2[%c0_1, %c0_2] : memref<4x128xbf16, #tpu.memory_space<vmem>>, vector<4x128xbf16>
    %cst = arith.constant dense<0.000000e+00> : vector<256x128xf32>
    %2 = tpu.matmul %0, %1, %cst {dimension_numbers = #tpu.dot_dimension_numbers<[1], [0], [0], [1], [0, 0, 1, 1], [], []>} : vector<256x4xbf16>, vector<4x128xbf16>, vector<256x128xf32> -> vector<256x128xf32>
    %c0_3 = arith.constant 0 : index
    %c0_4 = arith.constant 0 : index
    %3 = vector.load %arg3[%c0_3, %c0_4] : memref<1x128xf32, #tpu.memory_space<vmem>>, vector<1x128xf32>
    %4 = vector.broadcast %3 : vector<1x128xf32> to vector<256x128xf32>
    %5 = arith.addf %2, %4 : vector<256x128xf32>
    %c0_5 = arith.constant 0 : index
    %c0_6 = arith.constant 0 : index
    %6 = vector.load %arg4[%c0_5, %c0_6] : memref<256x128xf32, #tpu.memory_space<vmem>>, vector<256x128xf32>
    tpu.vector_store %arg4[%c0_5, %c0_6], %5 {strides = array<i32>} : memref<256x128xf32, #tpu.memory_space<vmem>>, vector<256x128xf32>,
    return
  }
  func.func @transform_0(%arg0: i32) -> (i32, i32) {
    %c0_i32 = arith.constant 0 : i32
    %c0_i32_0 = arith.constant 0 : i32
    return %arg0, %c0_i32 : i32, i32
  }
  func.func @transform_1(%arg0: i32) -> (i32, i32) {
    %c0_i32 = arith.constant 0 : i32
    %c0_i32_0 = arith.constant 0 : i32
    %c0_i32_1 = arith.constant 0 : i32
    return %c0_i32, %c0_i32_0 : i32, i32
  }
  func.func @transform_2(%arg0: i32) -> (i32, i32) {
    %c0_i32 = arith.constant 0 : i32
    %c0_i32_0 = arith.constant 0 : i32
    %c0_i32_1 = arith.constant 0 : i32
    return %c0_i32, %c0_i32_0 : i32, i32
  }
  func.func @transform_3(%arg0: i32) -> (i32, i32) {
    %c0_i32 = arith.constant 0 : i32
    %c0_i32_0 = arith.constant 0 : i32
    return %arg0, %c0_i32 : i32, i32
  }
}

module attributes {stable_mosaic.version = 11 : i64} {
  func.func @_gn_apply_res_relu_kernel(%arg0: i32, %arg1: i32, %arg2: memref<1x1x64x128xf32, #tpu.memory_space<vmem>>, %arg3: memref<1x1x128xf32, #tpu.memory_space<vmem>>, %arg4: memref<1x1x128xf32, #tpu.memory_space<vmem>>, %arg5: memref<1x1x64x128xf32, #tpu.memory_space<vmem>>, %arg6: memref<1x1x64x128xf32, #tpu.memory_space<vmem>>) attributes {dimension_semantics = [#tpu.dimension_semantics<parallel>, #tpu.dimension_semantics<parallel>], iteration_bounds = array<i64: 2, 4>, scalar_prefetch = 0 : i64, scratch_operands = 0 : i64, tpu.core_type = #tpu.core_type<tc>, window_params = [{transform_indices = @transform_0, window_bounds = array<i64: 1, 1, 64, 128>}, {transform_indices = @transform_1, window_bounds = array<i64: 1, 1, 128>}, {transform_indices = @transform_2, window_bounds = array<i64: 1, 1, 128>}, {transform_indices = @transform_3, window_bounds = array<i64: 1, 1, 64, 128>}, {transform_indices = @transform_4, window_bounds = array<i64: 1, 1, 64, 128>}]} {
    %c0 = arith.constant 0 : index
    %c0_0 = arith.constant 0 : index
    %c0_1 = arith.constant 0 : index
    %c0_2 = arith.constant 0 : index
    %0 = vector.load %arg2[%c0, %c0_0, %c0_1, %c0_2] : memref<1x1x64x128xf32, #tpu.memory_space<vmem>>, vector<1x1x64x128xf32>
    %1 = vector.shape_cast %0 : vector<1x1x64x128xf32> to vector<64x128xf32>
    %c0_3 = arith.constant 0 : index
    %c0_4 = arith.constant 0 : index
    %c0_5 = arith.constant 0 : index
    %2 = vector.load %arg3[%c0_3, %c0_4, %c0_5] : memref<1x1x128xf32, #tpu.memory_space<vmem>>, vector<1x1x128xf32>
    %3 = vector.shape_cast %2 : vector<1x1x128xf32> to vector<1x128xf32>
    %4 = vector.broadcast %3 : vector<1x128xf32> to vector<64x128xf32>
    %5 = arith.mulf %1, %4 : vector<64x128xf32>
    %c0_6 = arith.constant 0 : index
    %c0_7 = arith.constant 0 : index
    %c0_8 = arith.constant 0 : index
    %6 = vector.load %arg4[%c0_6, %c0_7, %c0_8] : memref<1x1x128xf32, #tpu.memory_space<vmem>>, vector<1x1x128xf32>
    %7 = vector.shape_cast %6 : vector<1x1x128xf32> to vector<1x128xf32>
    %8 = vector.broadcast %7 : vector<1x128xf32> to vector<64x128xf32>
    %9 = arith.addf %5, %8 : vector<64x128xf32>
    %c0_9 = arith.constant 0 : index
    %c0_10 = arith.constant 0 : index
    %c0_11 = arith.constant 0 : index
    %c0_12 = arith.constant 0 : index
    %10 = vector.load %arg5[%c0_9, %c0_10, %c0_11, %c0_12] : memref<1x1x64x128xf32, #tpu.memory_space<vmem>>, vector<1x1x64x128xf32>
    %11 = vector.shape_cast %10 : vector<1x1x64x128xf32> to vector<64x128xf32>
    %12 = arith.addf %9, %11 : vector<64x128xf32>
    %cst = arith.constant 0.000000e+00 : f32
    %13 = vector.broadcast %cst : f32 to vector<64x128xf32>
    %14 = arith.maximumf %12, %13 : vector<64x128xf32>
    %c0_13 = arith.constant 0 : index
    %c0_14 = arith.constant 0 : index
    %c0_15 = arith.constant 0 : index
    %c0_16 = arith.constant 0 : index
    %15 = vector.load %arg6[%c0_13, %c0_14, %c0_15, %c0_16] : memref<1x1x64x128xf32, #tpu.memory_space<vmem>>, vector<1x1x64x128xf32>
    %16 = vector.shape_cast %15 : vector<1x1x64x128xf32> to vector<64x128xf32>
    %17 = vector.shape_cast %14 : vector<64x128xf32> to vector<1x1x64x128xf32>
    tpu.vector_store %arg6[%c0_13, %c0_14, %c0_15, %c0_16], %17 {strides = array<i32>} : memref<1x1x64x128xf32, #tpu.memory_space<vmem>>, vector<1x1x64x128xf32>,
    return
  }
  func.func @transform_0(%arg0: i32, %arg1: i32) -> (i32, i32, i32, i32) {
    %c0_i32 = arith.constant 0 : i32
    %c0_i32_0 = arith.constant 0 : i32
    %c0_i32_1 = arith.constant 0 : i32
    return %arg0, %arg1, %c0_i32, %c0_i32_0 : i32, i32, i32, i32
  }
  func.func @transform_1(%arg0: i32, %arg1: i32) -> (i32, i32, i32) {
    %c0_i32 = arith.constant 0 : i32
    %c0_i32_0 = arith.constant 0 : i32
    %c0_i32_1 = arith.constant 0 : i32
    return %arg0, %c0_i32, %c0_i32_0 : i32, i32, i32
  }
  func.func @transform_2(%arg0: i32, %arg1: i32) -> (i32, i32, i32) {
    %c0_i32 = arith.constant 0 : i32
    %c0_i32_0 = arith.constant 0 : i32
    %c0_i32_1 = arith.constant 0 : i32
    return %arg0, %c0_i32, %c0_i32_0 : i32, i32, i32
  }
  func.func @transform_3(%arg0: i32, %arg1: i32) -> (i32, i32, i32, i32) {
    %c0_i32 = arith.constant 0 : i32
    %c0_i32_0 = arith.constant 0 : i32
    %c0_i32_1 = arith.constant 0 : i32
    return %arg0, %arg1, %c0_i32, %c0_i32_0 : i32, i32, i32, i32
  }
  func.func @transform_4(%arg0: i32, %arg1: i32) -> (i32, i32, i32, i32) {
    %c0_i32 = arith.constant 0 : i32
    %c0_i32_0 = arith.constant 0 : i32
    %c0_i32_1 = arith.constant 0 : i32
    return %arg0, %arg1, %c0_i32, %c0_i32_0 : i32, i32, i32, i32
  }
}

</mosaic_0001>

<bundles_post_ra>
// kernel: squeeze.4
= control target key start
LH: loop header
LB: loop body
LE: loop exit
PB: predicated region body
PF: predicated region fallthrough
CT: control target
= control target key end

     0   :  { %vm7_vm0 = vcmask 31744   ;;  %s48_s0 = inlined_call_operand.vmem [shape: f32[2,8], index: 0, kind: input, shape index: {}]   ;;  %s49_s1 = inlined_call_operand.vmem [shape: f32[2,2,4], index: 1, kind: output, shape index: {}]  }
   0x1   :  { %v4_v0 = vld [vmem:[%s48_s0] sm:$0x3]  ;;  %s28_s0 = smov 124  }
   0x2   :  { %5 = vst [vmem:[#allocation1] sm:$0x3] %v4_v0 }
   0x9   :  { %v9_v1 = vld [vmem:[#allocation1] sm:$0x3]  }
   0xa   :  { %v6_v2 = vld [vmem:[#allocation1] sm:$0x3]   ;;  %10 = vrot.lane.b32.xlu0 %v9_v1, %s28_s0 }
   0xb   :  { %8 = vst.msk [vmem:[#allocation0] ss:$8 sm:$0x3] %vm7_vm0, %v6_v2  }
  0x7c   :  { %v11_v3 = vpop.permute.xlu0 %10  }
  0x7d   :  { %14 = vst.msk [vmem:[#allocation0 + $0x1] ss:$8 sm:$0x3] %vm7_vm0, %v11_v3  }
  0x84   :  { %v18_v4 = vld [vmem:[#allocation0] sm:$0x3]  ;;  %v22_v5 = vld [vmem:[#allocation0 + $0x8] sm:$0x3] }
  0x85   :  { %20 = vst [vmem:[%s49_s1] sm:$0x3] %v18_v4  ;;  %26 = vst [vmem:[%s49_s1 + $0x2] sm:$0x3] %v22_v5 }

// kernel: residual_block_3d.7
= control target key start
LH: loop header
LB: loop body
LE: loop exit
PB: predicated region body
PF: predicated region fallthrough
CT: control target
= control target key end

     0   :  { %s588_s12 = smov 0   ;;  %s590_s13 = smov 0   ;;  %s649_s0 = inlined_call_operand.vmem [shape: f32[2,4,64,128], index: 0, kind: input, shape index: {}]   ;;  %s650_s1 = inlined_call_operand.vmem [shape: f32[2,1,128], index: 1, kind: input, shape index: {}]   ;;  %s651_s2 = inlined_call_operand.vmem [shape: f32[2,1,128], index: 2, kind: input, shape index: {}]   ;;  %s652_s3 = inlined_call_operand.vmem [shape: bf16[2,4,64,128], index: 3, kind: output, shape index: {}]  }
   0x1   :  { %s592_s14 = smov 0   ;;  %s594_s15 = smov 0  }
   0x2   :  { %s596_s16 = smov 0  }
   0x3 LB: > { %s22_s17 = sadd.s32 1, %s558_s14  ;;  %s25_s18 = sadd.s32 1, %s562_s15  ;;  %s566_s16 = sphi %s596_s16, %s13_s16   ;;  %s562_s15 = sphi %s594_s15, %s656_s15   ;;  %s558_s14 = sphi %s592_s14, %s655_s14   ;;  %s554_s13 = sphi %s590_s13, %s654_s13   ;;  %s550_s12 = sphi %s588_s12, %s653_s12  }
   0x4   : > { %p23_p0 = scmp.ge.s32.totalorder %s22_s17, 4  ;;  %p438_p1 = scmp.ge.s32.totalorder %s566_s16, 1 }
   0x5   : > { %p173_p2 = scmp.lt.s32.totalorder %s566_s16, 9 }
   0x6   : > { %s658_s17 = smov (%p23_p0, %s22_s17), 0  ;;  %s660_s18 = smov (!%p23_p0, %s25_s18), %s562_s15 }
   0x7   : > { %p174_p3 = pnand %p438_p1, %p173_p2  ;;  %p27_p4 = scmp.ge.s32.totalorder %s660_s18, 2 }
   0x8   : > { %p211_p5 = scmp.lt.s32.totalorder (!%p174_p3), %s554_s13, 1  ;;  %p213_p6 = scmp.lt.s32.totalorder (!%p174_p3), %s550_s12, 3 }
   0x9   : > { %s662_s18 = smov (%p27_p4, %s660_s18), 0  ;;  %177 = sbr.rel (%p174_p3) target bundleno = 35 (0x23), region = 32 }
  0x10   : > { %s664_s13 = smov (!%p211_p5, %s554_s13), 1  ;;  %s666_s12 = smov (!%p213_p6, %s550_s12), 3 }
  0x11   : > { %s440_s19 = sshll.u32 %s664_s13, 5  ;;  %s222_s22 = scalar_lea.vmem %s650_s1, %s664_s13 }
  0x12   : > { %s439_s23 = sshll.u32 %s666_s12, 3  ;;  %s225_s26 = scalar_lea.vmem %s651_s2, %s664_s13  ;;  %v445_v0 = vld [vmem:[%s222_s22] ss:$0 sm:$0xff] }
  0x13   : > { %s624_s27 = sadd.s32 %s440_s19, %s439_s23  ;;  %v446_v1 = vld [vmem:[%s225_s26] ss:$0 sm:$0xff] }
  0x14   : > { %s441_s28 = sshll.u32 %s624_s27, 3  ;;  %s444_s5 = sshll.u32 %s624_s27, 2 }
  0x15   : > { %s219_s4 = scalar_lea.vmem %s649_s0, %s441_s28  ;;  %s234_s8 = scalar_lea.vmem %s652_s3, %s444_s5 }
  0x16   : > { %v235_v2 = vld [vmem:[%s219_s4] sm:$0xff]  ;;  %v236_v3 = vld [vmem:[%s219_s4 + $0x8] sm:$0xff]  ;;  %v237_v4 = vld [vmem:[%s219_s4 + $0x10] sm:$0xff] }
  0x17   : > { %v250_v5 = vmul.f32 %v445_v0, %v235_v2  ;;  %v251_v6 = vmul.f32 %v445_v0, %v236_v3  ;;  %v238_v7 = vld [vmem:[%s219_s4 + $0x18] sm:$0xff]  ;;  %v252_v8 = vmul.f32 %v445_v0, %v237_v4  ;;  %v239_v9 = vld [vmem:[%s219_s4 + $0x20] sm:$0xff]  ;;  %v240_v10 = vld [vmem:[%s219_s4 + $0x28] sm:$0xff] }
  0x18   : > { %v253_v11 = vmul.f32 %v445_v0, %v238_v7  ;;  %v254_v12 = vmul.f32 %v445_v0, %v239_v9  ;;  %v255_v13 = vmul.f32 %v445_v0, %v240_v10  ;;  %v241_v14 = vld [vmem:[%s219_s4 + $0x30] sm:$0xff]  ;;  %v242_v15 = vld [vmem:[%s219_s4 + $0x38] sm:$0xff] }
  0x19   : > { %v265_v16 = vadd.f32 %v446_v1, %v250_v5  ;;  %v266_v17 = vadd.f32 %v446_v1, %v251_v6  ;;  %v267_v18 = vadd.f32 %v446_v1, %v252_v8  ;;  %v256_v19 = vmul.f32 %v445_v0, %v241_v14 }
  0x1a   : > { %v268_v20 = vadd.f32 %v446_v1, %v253_v11  ;;  %v269_v21 = vadd.f32 %v446_v1, %v254_v12  ;;  %v270_v22 = vadd.f32 %v446_v1, %v255_v13  ;;  %v257_v23 = vmul.f32 %v445_v0, %v242_v15 }
  0x1b   : > { %v273_v24 = vmax.f32 %v265_v16, 0.0  ;;  %v274_v25 = vmax.f32 %v266_v17, 0.0  ;;  %v275_v26 = vmax.f32 %v267_v18, 0.0  ;;  %v271_v27 = vadd.f32 %v446_v1, %v256_v19 }
  0x1c   : > { %v276_v28 = vmax.f32 %v268_v20, 0.0  ;;  %v277_v29 = vmax.f32 %v269_v21, 0.0  ;;  %v278_v30 = vmax.f32 %v270_v22, 0.0  ;;  %v272_v31 = vadd.f32 %v446_v1, %v257_v23 }
  0x1d   : > { %v468_v32 = vpack.c.bf16 %v274_v25, %v273_v24  ;;  %v279_v33 = vmax.f32 %v271_v27, 0.0 }
  0x1e   : > { %v473_v34 = vpack.c.bf16 %v276_v28, %v275_v26  ;;  %v478_v35 = vpack.c.bf16 %v278_v30, %v277_v29  ;;  %v280_v36 = vmax.f32 %v272_v31, 0.0 }
  0x1f   : > { %469 = vst [vmem:[%s234_s8] sm:$0xff] %v468_v32  }
  0x20   : > { %485 = vst [vmem:[%s234_s8 + $0x8] sm:$0xff] %v473_v34   ;;  %486 = vst [vmem:[%s234_s8 + $0x10] sm:$0xff] %v478_v35   ;;  %v483_v37 = vpack.c.bf16 %v280_v36, %v279_v33 }
  0x22   : > { %487 = vst [vmem:[%s234_s8 + $0x18] sm:$0xff] %v483_v37  }
  0x23 PF: > { %s13_s16 = sadd.s32 1, %s566_s16   ;;  %s653_s12 = smov %s558_s14 }
  0x24   : > { %p10_p7 = scmp.ge.s32.totalorder %s13_s16, 10   ;;  %s654_s13 = smov %s562_s15 }
  0x25   : > { %s655_s14 = smov %s658_s17  ;;  %s656_s15 = smov %s662_s18 }
  0x26   :  { %12 = sbr.rel (!%p10_p7) target bundleno = 3 (0x3), region = 68 }

// kernel: residual_block_3d.6
= control target key start
LH: loop header
LB: loop body
LE: loop exit
PB: predicated region body
PF: predicated region fallthrough
CT: control target
= control target key end

     0   :  { %s2248_s24 = smov 0   ;;  %s2250_s25 = smov 0   ;;  %s2495_s0 = inlined_call_operand.vmem [shape: bf16[2,6,80,12], index: 0, kind: input, shape index: {}, may-alias: {0,1,2}]   ;;  %s2496_s1 = inlined_call_operand.vmem [shape: bf16[2,6,80,12], index: 1, kind: input, shape index: {}, may-alias: {0,1,2}]   ;;  %s2497_s2 = inlined_call_operand.vmem [shape: bf16[2,6,80,12], index: 2, kind: input, shape index: {}, may-alias: {0,1,2}]   ;;  %s2498_s3 = inlined_call_operand.vmem [shape: bf16[9,12,128], index: 3, kind: input, shape index: {}]   ;;  %s2499_s4 = inlined_call_operand.vmem [shape: f32[1,128], index: 4, kind: input, shape index: {}]   ;;  %s2500_s5 = inlined_call_operand.vmem [shape: f32[2,4,64,128], index: 5, kind: output, shape index: {0}]   ;;  %s2501_s6 = inlined_call_operand.vmem [shape: f32[2,1,128], index: 6, kind: output, shape index: {1}]   ;;  %s2502_s7 = inlined_call_operand.vmem [shape: f32[2,1,128], index: 7, kind: output, shape index: {2}]  }
   0x1   :  { %s2252_s26 = smov 0   ;;  %s2254_s27 = smov 0  }
   0x2   :  { %s2256_s28 = smov 0  }
   0x3 LB: > { %s27_s29 = sadd.s32 1, %s2198_s26  ;;  %s30_s30 = sadd.s32 1, %s2202_s27  ;;  %s2206_s28 = sphi %s2256_s28, %s18_s28   ;;  %s2202_s27 = sphi %s2254_s27, %s2507_s27   ;;  %s2198_s26 = sphi %s2252_s26, %s2506_s26   ;;  %s2194_s25 = sphi %s2250_s25, %s2505_s25   ;;  %s2190_s24 = sphi %s2248_s24, %s2504_s24  }
   0x4   : > { %p28_p0 = scmp.ge.s32.totalorder %s27_s29, 4  ;;  %p1759_p1 = scmp.ge.s32.totalorder %s2206_s28, 1 }
   0x5   : > { %p302_p2 = scmp.lt.s32.totalorder %s2206_s28, 9 }
   0x6   : > { %s2509_s29 = smov (%p28_p0, %s27_s29), 0  ;;  %s2511_s30 = smov (!%p28_p0, %s30_s30), %s2202_s27 }
   0x7   : > { %p303_p3 = pnand %p1759_p1, %p302_p2  ;;  %p32_p4 = scmp.ge.s32.totalorder %s2511_s30, 2 }
   0x8   : > { %v2123_v0 = vld [vmem:[%s2498_s3 + $0x8] sm:$0x3f] (!%p303_p3)   ;;  %vm467_vm0 = vcmask (!%p303_p3), 1045504   ;;  %p368_p5 = scmp.lt.s32.totalorder (!%p303_p3), %s2194_s25, 1  ;;  %v2287_v1 = vld [vmem:[%s2498_s3 + $0x20] sm:$0x3f] (!%p303_p3)  }
   0x9   : > { %s2513_s30 = smov (%p32_p4, %s2511_s30), 0  ;;  %306 = sbr.rel (%p303_p3) target bundleno = 347 (0x15b), region = 40 }
   0xa   : > { %2069 = vmatprep.subr.msk.bf16.mxu1 (!%p303_p3), %vm467_vm0, %v2123_v0  ;;  %v469_v2 = vsel (!%p303_p3), %vm467_vm0, %v2123_v0, 0  ;;  %p370_p6 = scmp.lt.s32.totalorder (!%p303_p3), %s2190_s24, 5  ;;  %s377_s12 = sadd.s32 (!%p303_p3), 1, %s2190_s24  ;;  %2073 = vmatprep.subr.msk.bf16.mxu0 (!%p303_p3), %vm467_vm0, %v2287_v1  ;;  %v2298_v3 = vsel (!%p303_p3), %vm467_vm0, %v2287_v1, 0  ;;  %v2129_v4 = vld [vmem:[%s2498_s3] sm:$0x3f] (!%p303_p3)  }
   0xb   : > { %1914 = vmatpush3.bf16.msra.mxu1 (!%p303_p3), %v469_v2  ;;  %1954 = vmatpush3.bf16.msra.mxu0 (!%p303_p3), %v2298_v3  ;;  %p380_p7 = scmp.lt.s32.totalorder (!%p303_p3), %s377_s12, 5  ;;  %v2131_v5 = vld [vmem:[%s2498_s3 + $0x28] sm:$0x3f] (!%p303_p3)   ;;  %s388_s20 = sadd.s32 (!%p303_p3), 2, %s2190_s24  ;;  %vm454_vm1 = vcmask (!%p303_p3), 97280   ;;  %v560_v11 = vsel (!%p303_p3), %vm467_vm0, %v2129_v4, 0 }
   0xc   : > { %2070 = vmatprep.subr.msk.bf16.mxu1 (!%p303_p3), %vm467_vm0, %v2129_v4  ;;  %2075 = vmatprep.subr.msk.bf16.mxu0 (!%p303_p3), %vm467_vm0, %v2131_v5  ;;  %p2315_p8 = scmp.lt.s32.totalorder (!%p303_p3), %s388_s20, 5  ;;  %v2136_v15 = vld [vmem:[%s2498_s3 + $0x30] sm:$0x3f] (!%p303_p3)   ;;  %v1048_v22 = vsel (!%p303_p3), %vm467_vm0, %v2131_v5, 0  ;;  %v2144_v31 = vld [vmem:[%s2498_s3 + $0x38] sm:$0x3f] (!%p303_p3)  }
   0xd   : > { %v2138_v16 = vld [vmem:[%s2498_s3 + $0x10] sm:$0x3f] (!%p303_p3)   ;;  %v1172_v28 = vsel (!%p303_p3), %vm467_vm0, %v2136_v15, 0  ;;  %v2148_v34 = vld [vmem:[%s2498_s3 + $0x18] sm:$0x3f] (!%p303_p3)   ;;  %v1296_v41 = vsel (!%p303_p3), %vm467_vm0, %v2144_v31, 0 }
   0xe   : > { %v676_v32 = vsel (!%p303_p3), %vm467_vm0, %v2138_v16, 0  ;;  %v2154_v43 = vld [vmem:[%s2498_s3 + $0x40] sm:$0x3f] (!%p303_p3)   ;;  %v800_v45 = vsel (!%p303_p3), %vm467_vm0, %v2148_v34, 0  ;;  %p401_p9 = scmp.lt.s32.totalorder (!%p303_p3), %s2190_s24, 3  ;;  %p1864_p10 = scmp.ne.s32.totalorder (!%p303_p3), %s2190_s24, 0 }
   0xf   : > { %v1420_v52 = vsel (!%p303_p3), %vm467_vm0, %v2154_v43, 0  ;;  %v1863_v4 = vld [vmem:[%s2499_s4] ss:$0 sm:$0xff] (!%p303_p3) }
  0x10   : > { %s2515_s25 = smov (!%p368_p5, %s2194_s25), 1  ;;  %s2517_s12 = smov (!%p380_p7, %s377_s12), 5 }
  0x11   : > { %s371_s13 = scalar_select %p370_p6, %s2190_s24, 5 }
  0x12   : > { %s2306_s16 = smul.u32 60, %s2515_s25  ;;  %s2328_s15 = scalar_lea.vmem %s2501_s6, %s2515_s25 }
  0x13   : > { %s2079_s19 = smul.u32 10, %s371_s13  ;;  %s2519_s20 = smov (!%p2315_p8, %s388_s20), 5 }
  0x14   : > { %s2081_s8 = smul.u32 10, %s2517_s12  ;;  %s2335_s12 = scalar_lea.vmem %s2502_s7, %s2515_s25 }
  0x15   : > { %s374_s21 = sadd.s32 %s2306_s16, %s2079_s19  ;;  %s2082_s18 = smul.u32 10, %s2519_s20 }
  0x16   : > { %s1760_s23 = sshll.u32 %s374_s21, 2  ;;  %s384_s17 = sadd.s32 %s2081_s8, %s2306_s16 }
  0x17   : > { %s2322_s11 = scalar_lea.vmem %s2495_s0, %s1760_s23  ;;  %s1761_s21 = sshll.u32 %s384_s17, 2 }
  0x18   : > { %v416_v6 = vld [vmem:[%s2322_s11 + $0x4] sm:$0xf]  ;;  %v417_v7 = vld [vmem:[%s2322_s11 + $0x8] sm:$0xf]  ;;  %v418_v8 = vld [vmem:[%s2322_s11 + $0xc] sm:$0xf]  ;;  %s2345_s8 = scalar_lea.vmem %s2496_s1, %s1761_s21  ;;  %s395_s22 = sadd.s32 %s2082_s18, %s2306_s16 }
  0x19   : > { %v419_v9 = vld [vmem:[%s2322_s11 + $0x10] sm:$0xf]  ;;  %v1768_v10 = vcombine.low %v416_v6, %v417_v7  ;;  %v420_v13 = vld [vmem:[%s2322_s11 + $0x14] sm:$0xf]  ;;  %v421_v14 = vld [vmem:[%s2322_s11 + $0x18] sm:$0xf]  ;;  %v1778_v30 = vcombine.low %v417_v7, %v418_v8 }
  0x1a   : > { %v1769_v12 = vcombine.low %v418_v8, %v419_v9  ;;  %v2130_v17 = vld [vmem:[%s2345_s8 + $0x4] sm:$0xff]   ;;  %v1770_v18 = vcombine.low %v420_v13, %v421_v14  ;;  %v422_v19 = vld [vmem:[%s2322_s11 + $0x1c] sm:$0xf]  ;;  %v415_v20 = vld [vmem:[%s2322_s11] sm:$0xf]  ;;  %s1762_s19 = sshll.u32 %s395_s22, 2  ;;  %v1779_v33 = vcombine.low %v419_v9, %v420_v13 }
  0x1b   : > { %1915 = vmatprep.mubr.msk.bf16.mxu1 %vm454_vm1, %v1768_v10  ;;  %v2132_v21 = vld [vmem:[%s2345_s8 + $0xc] sm:$0xff]   ;;  %1955 = vmatprep.mubr.msk.bf16.mxu0 %vm454_vm1, %v2130_v17  ;;  %v425_v23 = vld [vmem:[%s2322_s11 + $0x20] sm:$0xf]  ;;  %s2376_s23 = scalar_lea.vmem %s2497_s2, %s1762_s19  ;;  %v1777_v26 = vcombine.low %v415_v20, %v416_v6  ;;  %v2139_v29 = vld [vmem:[%s2345_s8 + $0x18] sm:$0xff]   ;;  %v1780_v37 = vcombine.low %v421_v14, %v422_v19  ;;  %s1764_s22 = sshll.u32 %s2515_s25, 5 }
  0x1c   : > { %1916 = vmatmul.mubr.msk.bf16.vlgmr.msra.gmra.mrb[0].mxu1 %vm454_vm1, %v1769_v12  ;;  %v2135_v24 = vld [vmem:[%s2345_s8 + $0x8] sm:$0xff]   ;;  %1956 = vmatmul.mubr.msk.bf16.vlgmr.msra.gmra.mrb[0].mxu0 %vm454_vm1, %v2132_v21  ;;  %v1771_v25 = vcombine.low %v422_v19, %v425_v23  ;;  %v2137_v27 = vld [vmem:[%s2345_s8 + $0x10] sm:$0xff]   ;;  %v2140_v35 = vld [vmem:[%s2345_s8 + $0x20] sm:$0xff]  }
  0x1d   : > { %1924 = vmatpush3.bf16.msra.mxu1 %v560_v11  ;;  %1919 = vmatprep.mubr.msk.bf16.mxu1 %vm454_vm1, %v1770_v18  ;;  %v2143_v36 = vld [vmem:[%s2376_s23] sm:$0xff]   ;;  %v2146_v38 = vld [vmem:[%s2322_s11 + $0x8] sm:$0xff]   ;;  %v2147_v40 = vld [vmem:[%s2322_s11 + $0x10] sm:$0xff]  }
  0x1e   : > { %1964 = vmatpush3.bf16.msra.mxu0 %v1048_v22  ;;  %1965 = vmatprep.mubr.msk.bf16.mxu0 %vm454_vm1, %v2135_v24  ;;  %v2145_v39 = vld [vmem:[%s2376_s23 + $0x8] sm:$0xff]   ;;  %v2149_v42 = vld [vmem:[%s2376_s23 + $0x10] sm:$0xff]   ;;  %v2151_v44 = vld [vmem:[%s2322_s11 + $0x18] sm:$0xff]  }
  0x1f   : > { %2076 = vmatprep.subr.msk.bf16.mxu0 %vm467_vm0, %v2136_v15  ;;  %2071 = vmatprep.subr.msk.bf16.mxu1 %vm467_vm0, %v2138_v16  ;;  %v2150_v46 = vld [vmem:[%s2376_s23 + $0x18] sm:$0xff]   ;;  %v2153_v47 = vld [vmem:[%s2376_s23 + $0x4] sm:$0xff]   ;;  %v2155_v50 = vld [vmem:[%s2376_s23 + $0xc] sm:$0xff]  }
  0x20   : > { %v2152_v48 = vld [vmem:[%s2322_s11 + $0x20] sm:$0xff]   ;;  %v2158_v51 = vld [vmem:[%s2376_s23 + $0x14] sm:$0xff]   ;;  %v2157_v53 = vld [vmem:[%s2345_s8 + $0x8] sm:$0xff]   ;;  %s402_s11 = scalar_select %p401_p9, %s2190_s24, 3 }
  0x21   : > { %v2156_v49 = vld [vmem:[%s2345_s8] sm:$0xff]   ;;  %v2160_v54 = vld [vmem:[%s2345_s8 + $0x10] sm:$0xff]   ;;  %v2162_v56 = vld [vmem:[%s2376_s23 + $0x8] sm:$0xff]  }
  0x22   : > { %v2159_v55 = vld [vmem:[%s2376_s23 + $0x1c] sm:$0xff]   ;;  %v2164_v58 = vld [vmem:[%s2345_s8 + $0x14] sm:$0xff]   ;;  %s1763_s18 = sshll.u32 %s402_s11, 3 }
  0x23   : > { %v2161_v57 = vld [vmem:[%s2345_s8 + $0x18] sm:$0xff]   ;;  %v2163_v59 = vld [vmem:[%s2376_s23 + $0x10] sm:$0xff]   ;;  %v2167_v62 = vld [vmem:[%s2376_s23 + $0x20] sm:$0xff]   ;;  %s405_s19 = sadd.s32 %s1764_s22, %s1763_s18 }
  0x24   : > { %1920 = vmatmul.mubr.msk.bf16.gmra.mrb[4].mxu1 %vm454_vm1, %v1771_v25  ;;  %v2166_v60 = vld [vmem:[%s2376_s23 + $0x18] sm:$0xff]   ;;  %s1765_s20 = sshll.u32 %s405_s19, 3 }
  0x25   : > { %1925 = vmatprep.mubr.msk.bf16.mxu1 %vm454_vm1, %v1777_v26  ;;  %v2165_v61 = vld [vmem:[%s2345_s8 + $0x1c] sm:$0xff]   ;;  %s2462_s9 = scalar_lea.vmem %s2500_s5, %s1765_s20 }
  0x28   : > { %1966 = vmatmul.mubr.msk.bf16.vlgmr.msra.gmra.mrb[0].mxu0 %vm454_vm1, %v2137_v27 }
  0x29   : > { %1974 = vmatpush3.bf16.msra.mxu0 %v1172_v28  ;;  %1969 = vmatprep.mubr.msk.bf16.mxu0 %vm454_vm1, %v2139_v29 }
  0x2a   : > { %2077 = vmatprep.subr.msk.bf16.mxu0 %vm467_vm0, %v2144_v31 }
  0x2c   : > { %1926 = vmatmul.mubr.msk.bf16.vlgmr.msra.gmra.mrb[0].mxu1 %vm454_vm1, %v1778_v30 }
  0x2d   : > { %1934 = vmatpush3.bf16.msra.mxu1 %v676_v32  ;;  %1929 = vmatprep.mubr.msk.bf16.mxu1 %vm454_vm1, %v1779_v33 }
  0x2e   : > { %2072 = vmatprep.subr.msk.bf16.mxu1 %vm467_vm0, %v2148_v34 }
  0x30   : > { %1970 = vmatmul.mubr.msk.bf16.gmra.mrb[4].mxu0 %vm454_vm1, %v2140_v35 }
  0x31   : > { %1975 = vmatprep.mubr.msk.bf16.mxu0 %vm454_vm1, %v2143_v36 }
  0x34   : > { %1930 = vmatmul.mubr.msk.bf16.gmra.mrb[4].mxu1 %vm454_vm1, %v1780_v37 }
  0x35   : > { %1935 = vmatprep.mubr.msk.bf16.mxu1 %vm454_vm1, %v2146_v38 }
  0x38   : > { %1976 = vmatmul.mubr.msk.bf16.vlgmr.msra.gmra.mrb[0].mxu0 %vm454_vm1, %v2145_v39 }
  0x39   : > { %1984 = vmatpush3.bf16.msra.mxu0 %v1296_v41  ;;  %1979 = vmatprep.mubr.msk.bf16.mxu0 %vm454_vm1, %v2149_v42 }
  0x3a   : > { %2078 = vmatprep.subr.msk.bf16.mxu0 %vm467_vm0, %v2154_v43 }
  0x3c   : > { %1936 = vmatmul.mubr.msk.bf16.vlgmr.msra.gmra.mrb[0].mxu1 %vm454_vm1, %v2147_v40 }
  0x3d   : > { %1944 = vmatpush3.bf16.msra.mxu1 %v800_v45  ;;  %1939 = vmatprep.mubr.msk.bf16.mxu1 %vm454_vm1, %v2151_v44 }
  0x3e   : > { %2074 = vmatprep.subr.msk.bf16.mxu1 %vm467_vm0, %v2287_v1 }
  0x40   : > { %1980 = vmatmul.mubr.msk.bf16.gmra.mrb[4].mxu0 %vm454_vm1, %v2150_v46 }
  0x41   : > { %1985 = vmatprep.mubr.msk.bf16.mxu0 %vm454_vm1, %v2153_v47 }
  0x44   : > { %1940 = vmatmul.mubr.msk.bf16.gmra.mrb[4].mxu1 %vm454_vm1, %v2152_v48 }
  0x45   : > { %1945 = vmatprep.mubr.msk.bf16.mxu1 %vm454_vm1, %v2156_v49 }
  0x48   : > { %1986 = vmatmul.mubr.msk.bf16.vlgmr.msra.gmra.mrb[0].mxu0 %vm454_vm1, %v2155_v50 }
  0x49   : > { %1994 = vmatpush3.bf16.msra.mxu0 %v1420_v52  ;;  %1989 = vmatprep.mubr.msk.bf16.mxu0 %vm454_vm1, %v2158_v51 }
  0x4c   : > { %1946 = vmatmul.mubr.msk.bf16.vlgmr.msra.gmra.mrb[0].mxu1 %vm454_vm1, %v2157_v53 }
  0x4d   : > { %2004 = vmatpush3.bf16.msra.mxu1 %v2298_v3  ;;  %1949 = vmatprep.mubr.msk.bf16.mxu1 %vm454_vm1, %v2160_v54 }
  0x50   : > { %1990 = vmatmul.mubr.msk.bf16.gmra.mrb[4].mxu0 %vm454_vm1, %v2159_v55 }
  0x51   : > { %1995 = vmatprep.mubr.msk.bf16.mxu0 %vm454_vm1, %v2162_v56 }
  0x54   : > { %1950 = vmatmul.mubr.msk.bf16.gmra.mrb[4].mxu1 %vm454_vm1, %v2161_v57 }
  0x55   : > { %1959 = vmatprep.mubr.msk.bf16.mxu1 %vm454_vm1, %v2164_v58 }
  0x58   : > { %1996 = vmatmul.mubr.msk.bf16.vlgmr.msra.gmra.mrb[0].mxu0 %vm454_vm1, %v2163_v59 }
  0x59   : > { %1999 = vmatprep.mubr.msk.bf16.mxu0 %vm454_vm1, %v2166_v60 }
  0x60   : > { %1960 = vmatmul.mubr.msk.bf16.vlgmr.msra.gmra.mrb[4].mxu1 %vm454_vm1, %v2165_v61  ;;  %2000 = vmatmul.mubr.msk.bf16.gmra.mrb[4].mxu0 %vm454_vm1, %v2167_v62 }
 0x11f   : > { %v1947_v63 = vpop.f32.mrb[0].mxu1 }
 0x120   : > { %v836_v0 = vpop.f32.mrb[1].mxu1 }
 0x121   : > { %v1948_v1 = vpop.f32.mrb[2].mxu1 }
 0x122   : > { %v839_v2 = vpop.f32.mrb[3].mxu1 }
 0x12b   : > { %v1997_v3 = vpop.f32.mrb[0].mxu0 }
 0x12c   : > { %v2005_v5 = vadd.f32 %v1997_v3, %v1947_v63  ;;  %v1456_v6 = vpop.f32.mrb[1].mxu0 }
 0x12d   : > { %v2006_v7 = vadd.f32 %v1456_v6, %v836_v0  ;;  %v1998_v8 = vpop.f32.mrb[2].mxu0 }
 0x12e   : > { %v1504_v9 = vadd.f32 %v2005_v5, %v1863_v4  ;;  %v2007_v10 = vadd.f32 %v1998_v8, %v1948_v1  ;;  %v1459_v11 = vpop.f32.mrb[3].mxu0 }
 0x12f   : > { %v1502_v12 = vadd.f32 %v2006_v7, %v1863_v4  ;;  %v2008_v13 = vadd.f32 %v1459_v11, %v839_v2 }
 0x130   : > { %1512 = vst [vmem:[%s2462_s9 + $0x10] sm:$0xff] %v1504_v9  ;;  %v1505_v14 = vadd.f32 %v2007_v10, %v1863_v4  ;;  %v1533_v26 = vmul.f32 %v1504_v9, %v1504_v9 }
 0x131   : > { %1510 = vst [vmem:[%s2462_s9] sm:$0xff] %v1502_v12  ;;  %v1503_v15 = vadd.f32 %v2008_v13, %v1863_v4  ;;  %v1531_v18 = vmul.f32 %v1502_v12, %v1502_v12 }
 0x132   : > { %1513 = vst [vmem:[%s2462_s9 + $0x18] sm:$0xff] %v1505_v14  ;;  %v1534_v31 = vmul.f32 %v1505_v14, %v1505_v14 }
 0x133   : > { %v1961_v16 = vpop.f32.mrb[4].mxu1  ;;  %1511 = vst [vmem:[%s2462_s9 + $0x8] sm:$0xff] %v1503_v15  ;;  %v1518_v19 = vadd.f32 %v1503_v15, %v1502_v12  ;;  %v1532_v20 = vmul.f32 %v1503_v15, %v1503_v15  ;;  %v2001_v21 = vpop.f32.mrb[4].mxu0 }
 0x134   : > { %v976_v17 = vpop.f32.mrb[5].mxu1  ;;  %v2009_v23 = vadd.f32 %v2001_v21, %v1961_v16  ;;  %v1472_v24 = vpop.f32.mrb[5].mxu0 }
 0x135   : > { %v1962_v22 = vpop.f32.mrb[6].mxu1  ;;  %v1519_v27 = vadd.f32 %v1518_v19, %v1504_v9  ;;  %v1539_v28 = vadd.f32 %v1532_v20, %v1531_v18  ;;  %v2010_v29 = vadd.f32 %v1472_v24, %v976_v17  ;;  %v2002_v30 = vpop.f32.mrb[6].mxu0 }
 0x136   : > { %v979_v25 = vpop.f32.mrb[7].mxu1  ;;  %v1508_v32 = vadd.f32 %v2009_v23, %v1863_v4  ;;  %v2011_v33 = vadd.f32 %v2002_v30, %v1962_v22  ;;  %v1475_v34 = vpop.f32.mrb[7].mxu0 }
 0x137   : > { %v1540_v35 = vadd.f32 %v1539_v28, %v1533_v26  ;;  %v1506_v36 = vadd.f32 %v2010_v29, %v1863_v4  ;;  %v1520_v37 = vadd.f32 %v1519_v27, %v1505_v14  ;;  %v2012_v38 = vadd.f32 %v1475_v34, %v979_v25 }
 0x138   : > { %1516 = vst [vmem:[%s2462_s9 + $0x30] sm:$0xff] %v1508_v32  ;;  %v1509_v39 = vadd.f32 %v2011_v33, %v1863_v4  ;;  %v1537_v47 = vmul.f32 %v1508_v32, %v1508_v32 }
 0x139   : > { %1514 = vst [vmem:[%s2462_s9 + $0x20] sm:$0xff] %v1506_v36  ;;  %v1521_v40 = vadd.f32 %v1520_v37, %v1506_v36  ;;  %v1535_v41 = vmul.f32 %v1506_v36, %v1506_v36  ;;  %v1541_v42 = vadd.f32 %v1540_v35, %v1534_v31  ;;  %v1507_v43 = vadd.f32 %v2012_v38, %v1863_v4 }
 0x13a   : > { %1517 = vst [vmem:[%s2462_s9 + $0x38] sm:$0xff] %v1509_v39  ;;  %v1538_v50 = vmul.f32 %v1509_v39, %v1509_v39 }
 0x13b   : > { %v1542_v44 = vadd.f32 %v1541_v42, %v1535_v41  ;;  %1515 = vst [vmem:[%s2462_s9 + $0x28] sm:$0xff] %v1507_v43  ;;  %v1522_v45 = vadd.f32 %v1521_v40, %v1507_v43  ;;  %v1536_v46 = vmul.f32 %v1507_v43, %v1507_v43 }
 0x13d   : > { %v1523_v48 = vadd.f32 %v1522_v45, %v1508_v32  ;;  %v1543_v49 = vadd.f32 %v1542_v44, %v1536_v46 }
 0x13f   : > { %v1524_v51 = vadd.f32 %v1523_v48, %v1509_v39  ;;  %v1544_v52 = vadd.f32 %v1543_v49, %v1537_v47 }
 0x141   : > { %v1525_v53 = vrot.slane %v1524_v51, 4  ;;  %v1545_v54 = vadd.f32 %v1544_v52, %v1538_v50 }
 0x143   : > { %v1526_v55 = vadd.f32 %v1525_v53, %v1524_v51  ;;  %v1546_v56 = vrot.slane %v1545_v54, 4 }
 0x145   : > { %v1527_v57 = vrot.slane %v1526_v55, 2  ;;  %v1547_v58 = vadd.f32 %v1546_v56, %v1545_v54 }
 0x147   : > { %v1528_v59 = vadd.f32 %v1527_v57, %v1526_v55  ;;  %v1548_v60 = vrot.slane %v1547_v58, 2  ;;  %1555 = sbr.rel (%p1864_p10) target bundleno = 336 (0x150), region = 44 }
 0x149   : > { %v1529_v61 = vrot.slane %v1528_v59, 1  ;;  %v1549_v62 = vadd.f32 %v1548_v60, %v1547_v58 }
 0x14b   : > { %v1530_v63 = vadd.f32 %v1529_v61, %v1528_v59  ;;  %v1550_v0 = vrot.slane %v1549_v62, 1 }
 0x14d   : > { %v1551_v1 = vadd.f32 %v1550_v0, %v1549_v62  ;;  %1556 = vst [vmem:[%s2328_s15] sm:$0x1] (!%p1864_p10), %v1530_v63 }
 0x14f   : > { %1557 = vst [vmem:[%s2335_s12] sm:$0x1] %v1551_v1 }
 0x150 PF: > { %p1865_p11 = scmp.le.s32.totalorder %s2190_s24, 0 }
 0x152   : > { %1561 = sbr.rel (%p1865_p11) target bundleno = 347 (0x15b), region = 48 }
 0x156   : > { %v1562_v2 = vld [vmem:[%s2328_s15] sm:$0x1] (!%p1865_p11) }
 0x157   : > { %v1565_v3 = vld [vmem:[%s2335_s12] sm:$0x1] (!%p1865_p11)  ;;  %v1563_v4 = vadd.f32 (!%p1865_p11), %v1562_v2, %v1530_v63 }
 0x158   : > { %v1566_v5 = vadd.f32 (!%p1865_p11), %v1565_v3, %v1551_v1 }
 0x159   : > { %1564 = vst [vmem:[%s2328_s15] sm:$0x1] %v1563_v4 }
 0x15a   : > { %1567 = vst [vmem:[%s2335_s12] sm:$0x1] %v1566_v5 }
 0x15b PF: > { %s18_s28 = sadd.s32 1, %s2206_s28   ;;  %s2504_s24 = smov %s2198_s26 }
 0x15c   : > { %p15_p12 = scmp.ge.s32.totalorder %s18_s28, 10   ;;  %s2505_s25 = smov %s2202_s27 }
 0x15d   : > { %s2506_s26 = smov %s2509_s29  ;;  %s2507_s27 = smov %s2513_s30 }
 0x15e   :  { %17 = sbr.rel (!%p15_p12) target bundleno = 3 (0x3), region = 116 }

// kernel: residual_block_3d.8
= control target key start
LH: loop header
LB: loop body
LE: loop exit
PB: predicated region body
PF: predicated region fallthrough
CT: control target
= control target key end

     0   :  { %s2348_s24 = smov 0   ;;  %s2350_s25 = smov 0   ;;  %s2628_s0 = inlined_call_operand.vmem [shape: bf16[2,6,80,24], index: 0, kind: input, shape index: {}, may-alias: {0,1,2}]   ;;  %s2629_s1 = inlined_call_operand.vmem [shape: bf16[2,6,80,24], index: 1, kind: input, shape index: {}, may-alias: {0,1,2}]   ;;  %s2630_s2 = inlined_call_operand.vmem [shape: bf16[2,6,80,24], index: 2, kind: input, shape index: {}, may-alias: {0,1,2}]   ;;  %s2631_s3 = inlined_call_operand.vmem [shape: bf16[9,24,128], index: 3, kind: input, shape index: {}]   ;;  %s2632_s4 = inlined_call_operand.vmem [shape: f32[1,128], index: 4, kind: input, shape index: {}]   ;;  %s2633_s5 = inlined_call_operand.vmem [shape: f32[2,4,64,128], index: 5, kind: output, shape index: {0}]   ;;  %s2634_s6 = inlined_call_operand.vmem [shape: f32[2,1,128], index: 6, kind: output, shape index: {1}]   ;;  %s2635_s7 = inlined_call_operand.vmem [shape: f32[2,1,128], index: 7, kind: output, shape index: {2}]  }
   0x1   :  { %s2352_s26 = smov 0   ;;  %s2354_s27 = smov 0  }
   0x2   :  { %s2356_s28 = smov 0  }
   0x3 LB: > { %s27_s29 = sadd.s32 1, %s2298_s26  ;;  %s30_s30 = sadd.s32 1, %s2302_s27  ;;  %s2306_s28 = sphi %s2356_s28, %s18_s28   ;;  %s2302_s27 = sphi %s2354_s27, %s2642_s27   ;;  %s2298_s26 = sphi %s2352_s26, %s2641_s26   ;;  %s2294_s25 = sphi %s2350_s25, %s2640_s25   ;;  %s2290_s24 = sphi %s2348_s24, %s2639_s24  }
   0x4   : > { %p28_p0 = scmp.ge.s32.totalorder %s27_s29, 4  ;;  %p1804_p1 = scmp.ge.s32.totalorder %s2306_s28, 1 }
   0x5   : > { %p302_p2 = scmp.lt.s32.totalorder %s2306_s28, 9 }
   0x6   : > { %s2644_s29 = smov (%p28_p0, %s27_s29), 0  ;;  %s2646_s30 = smov (!%p28_p0, %s30_s30), %s2302_s27 }
   0x7   : > { %p303_p3 = pnand %p1804_p1, %p302_p2  ;;  %p32_p4 = scmp.ge.s32.totalorder %s2646_s30, 2 }
   0x8   : > { %v2214_v0 = vld [vmem:[%s2631_s3 + $0xc] sm:$0xff] (!%p303_p3)   ;;  %vm473_vm0 = vcmask (!%p303_p3), 1043456   ;;  %p368_p5 = scmp.lt.s32.totalorder (!%p303_p3), %s2294_s25, 1  ;;  %v2216_v2 = vld [vmem:[%s2631_s3 + $0x14] ss:$0 sps:$4 sm:$0xff] (!%p303_p3)   ;;  %p370_p6 = scmp.lt.s32.totalorder (!%p303_p3), %s2290_s24, 5 }
   0x9   : > { %s2648_s30 = smov (%p32_p4, %s2646_s30), 0  ;;  %306 = sbr.rel (%p303_p3) target bundleno = 348 (0x15c), region = 40 }
   0xa   : > { %2636 = sst [smem:[#allocation2_spill]] %s2648_s30  ;;  %v2386_v1 = vld [vmem:[%s2631_s3 + $0x30] sm:$0xff] (!%p303_p3)   ;;  %1984 = vmatprep.subr.bf16.mxu1 (!%p303_p3), %v2214_v0  ;;  %v2395_v3 = vld [vmem:[%s2631_s3 + $0x38] ss:$0 sps:$4 sm:$0xff] (!%p303_p3)   ;;  %v475_v4 = vsel (!%p303_p3), %vm473_vm0, %v2216_v2, 0  ;;  %s377_s16 = sadd.s32 (!%p303_p3), 1, %s2290_s24 }
   0xb   : > { %2032 = vmatprep.subr.bf16.mxu0 (!%p303_p3), %v2386_v1  ;;  %1985 = vmatpush3.bf16.msra.mxu1 (!%p303_p3), %v2214_v0  ;;  %v2222_v5 = vld [vmem:[%s2631_s3] sm:$0xff] (!%p303_p3)   ;;  %v2411_v6 = vsel (!%p303_p3), %vm473_vm0, %v2395_v3, 0  ;;  %p380_p7 = scmp.lt.s32.totalorder (!%p303_p3), %s377_s16, 5  ;;  %s388_s8 = sadd.s32 (!%p303_p3), 2, %s2290_s24  ;;  %vm460_vm1 = vcmask (!%p303_p3), 195584   ;;  %v2233_v23 = vld [vmem:[%s2631_s3 + $0x18] sm:$0xff] (!%p303_p3)  }
   0xc   : > { %2033 = vmatpush3.bf16.msra.mxu0 (!%p303_p3), %v2386_v1  ;;  %2160 = vmatprep.subr.msk.bf16.mxu1 (!%p303_p3), %vm473_vm0, %v2216_v2  ;;  %v2224_v7 = vld [vmem:[%s2631_s3 + $0x3c] sm:$0xff] (!%p303_p3)   ;;  %p2422_p8 = scmp.lt.s32.totalorder (!%p303_p3), %s388_s8, 5  ;;  %v2229_v10 = vld [vmem:[%s2631_s3 + $0x8] ss:$0 sps:$4 sm:$0xff] (!%p303_p3)   ;;  %v2226_v15 = vld [vmem:[%s2631_s3 + $0x44] ss:$0 sps:$4 sm:$0xff] (!%p303_p3)  }
   0xd   : > { %2164 = vmatprep.subr.msk.bf16.mxu0 (!%p303_p3), %vm473_vm0, %v2395_v3  ;;  %v570_v26 = vsel (!%p303_p3), %vm473_vm0, %v2229_v10, 0  ;;  %v1078_v27 = vsel (!%p303_p3), %vm473_vm0, %v2226_v15, 0  ;;  %v2231_v28 = vld [vmem:[%s2631_s3 + $0x48] sm:$0xff] (!%p303_p3)   ;;  %v2235_v33 = vld [vmem:[%s2631_s3 + $0x50] ss:$0 sps:$4 sm:$0xff] (!%p303_p3)   ;;  %v2241_v38 = vld [vmem:[%s2631_s3 + $0x54] sm:$0xff] (!%p303_p3)  }
   0xe   : > { %v2239_v36 = vld [vmem:[%s2631_s3 + $0x20] ss:$0 sps:$4 sm:$0xff] (!%p303_p3)   ;;  %v1207_v37 = vsel (!%p303_p3), %vm473_vm0, %v2235_v33, 0  ;;  %v2245_v40 = vld [vmem:[%s2631_s3 + $0x24] sm:$0xff] (!%p303_p3)   ;;  %v2247_v47 = vld [vmem:[%s2631_s3 + $0x5c] ss:$0 sps:$4 sm:$0xff] (!%p303_p3)  }
   0xf   : > { %1987 = vmatpush3.bf16.msra.mxu1 (!%p303_p3), %v475_v4  ;;  %v691_v41 = vsel (!%p303_p3), %vm473_vm0, %v2239_v36, 0  ;;  %v2251_v50 = vld [vmem:[%s2631_s3 + $0x2c] ss:$0 sps:$4 sm:$0xff] (!%p303_p3)   ;;  %v1336_v51 = vsel (!%p303_p3), %vm473_vm0, %v2247_v47, 0  ;;  %v2253_v52 = vld [vmem:[%s2631_s3 + $0x60] sm:$0xff] (!%p303_p3)   ;;  %p401_p9 = scmp.lt.s32.totalorder (!%p303_p3), %s2290_s24, 3 }
  0x10   : > { %s2650_s25 = smov (!%p368_p5, %s2294_s25), 1  ;;  %s2652_s16 = smov (!%p380_p7, %s377_s16), 5  ;;  %2035 = vmatpush3.bf16.msra.mxu0 %v2411_v6  ;;  %1996 = vmatprep.subr.bf16.mxu1 %v2222_v5  ;;  %v820_v54 = vsel %vm473_vm0, %v2251_v50, 0  ;;  %v2258_v60 = vld [vmem:[%s2631_s3 + $0x68] ss:$0 sps:$4 sm:$0xff]  }
  0x11   : > { %s2414_s19 = smul.u32 60, %s2650_s25  ;;  %2044 = vmatprep.subr.bf16.mxu0 %v2224_v7  ;;  %s2431_s14 = scalar_lea.vmem %s2634_s6, %s2650_s25  ;;  %v1465_v63 = vsel %vm473_vm0, %v2258_v60, 0 }
  0x12   : > { %s371_s22 = scalar_select %p370_p6, %s2290_s24, 5 }
  0x13   : > { %s2172_s9 = smul.u32 10, %s2652_s16  ;;  %s2654_s8 = smov (!%p2422_p8, %s388_s8), 5 }
  0x14   : > { %s2170_s23 = smul.u32 10, %s371_s22  ;;  %p1926_p10 = scmp.ne.s32.totalorder %s2290_s24, 0 }
  0x15   : > { %s384_s17 = sadd.s32 %s2172_s9, %s2414_s19  ;;  %s2448_s9 = scalar_lea.vmem %s2635_s7, %s2650_s25 }
  0x16   : > { %s374_s11 = sadd.s32 %s2414_s19, %s2170_s23  ;;  %s1806_s16 = sshll.u32 %s384_s17, 2 }
  0x17   : > { %s1805_s15 = sshll.u32 %s374_s11, 2  ;;  %s2442_s30 = scalar_lea.vmem %s2629_s1, %s1806_s16 }
  0x18   : > { %s2437_s21 = scalar_lea.vmem %s2628_s0, %s1805_s15  ;;  %v2223_v14 = vld [vmem:[%s2442_s30 + $0x4] sm:$0xff]   ;;  %s2173_s20 = smul.u32 10, %s2654_s8  ;;  %v2225_v17 = vld [vmem:[%s2442_s30 + $0xc] sm:$0xff]   ;;  %v2234_v32 = vld [vmem:[%s2442_s30 + $0x18] sm:$0xff]  }
  0x19   : > { %v416_v8 = vld [vmem:[%s2437_s21 + $0x4] sm:$0xf]  ;;  %v417_v9 = vld [vmem:[%s2437_s21 + $0x8] sm:$0xf]  ;;  %v418_v11 = vld [vmem:[%s2437_s21 + $0xc] sm:$0xf]  ;;  %2036 = vmatprep.mubr.msk.bf16.mxu0 %vm460_vm1, %v2223_v14 }
  0x1a   : > { %v419_v12 = vld [vmem:[%s2437_s21 + $0x10] sm:$0xf]  ;;  %v1814_v13 = vcombine.low %v416_v8, %v417_v9  ;;  %v420_v18 = vld [vmem:[%s2437_s21 + $0x14] sm:$0xf]  ;;  %v415_v19 = vld [vmem:[%s2437_s21] sm:$0xf]  ;;  %s395_s22 = sadd.s32 %s2173_s20, %s2414_s19  ;;  %2037 = vmatmul.mubr.msk.bf16.vlgmr.msra.gmra.mrb[0].mxu0 %vm460_vm1, %v2225_v17  ;;  %v1825_v34 = vcombine.low %v417_v9, %v418_v11 }
  0x1b   : > { %v1815_v16 = vcombine.low %v418_v11, %v419_v12  ;;  %v421_v20 = vld [vmem:[%s2437_s21 + $0x18] sm:$0xf]  ;;  %v422_v21 = vld [vmem:[%s2437_s21 + $0x1c] sm:$0xf]  ;;  %v426_v22 = vld [vmem:[%s2437_s21 + $0x20] sm:$0xf]  ;;  %2045 = vmatpush3.bf16.msra.mxu0 %v2224_v7  ;;  %v1824_v30 = vcombine.low %v415_v19, %v416_v8  ;;  %v1826_v35 = vcombine.low %v419_v12, %v420_v18 }
  0x1c   : > { %1988 = vmatprep.mubr.msk.bf16.mxu1 %vm460_vm1, %v1814_v13  ;;  %v1816_v24 = vcombine.low %v420_v18, %v421_v20  ;;  %v2230_v25 = vld [vmem:[%s2442_s30 + $0x8] sm:$0xff]   ;;  %s1807_s8 = sshll.u32 %s395_s22, 2  ;;  %2166 = vmatprep.subr.msk.bf16.mxu0 %vm473_vm0, %v2226_v15  ;;  %v1817_v29 = vcombine.low %v422_v21, %v426_v22  ;;  %v2232_v31 = vld [vmem:[%s2442_s30 + $0x10] sm:$0xff]   ;;  %v2236_v39 = vld [vmem:[%s2442_s30 + $0x20] sm:$0xff]   ;;  %v1827_v43 = vcombine.low %v421_v20, %v422_v21  ;;  %s1809_s16 = sshll.u32 %s2650_s25, 5 }
  0x1d   : > { %1989 = vmatmul.mubr.msk.bf16.vlgmr.msra.gmra.mrb[0].mxu1 %vm460_vm1, %v1815_v16  ;;  %s2489_s11 = scalar_lea.vmem %s2630_s2, %s1807_s8  ;;  %2048 = vmatprep.mubr.msk.bf16.mxu0 %vm460_vm1, %v2230_v25  ;;  %v2243_v44 = vld [vmem:[%s2437_s21 + $0x8] sm:$0xff]   ;;  %v2244_v48 = vld [vmem:[%s2437_s21 + $0x10] sm:$0xff]   ;;  %v2249_v49 = vld [vmem:[%s2437_s21 + $0x18] sm:$0xff]  }
  0x1e   : > { %1997 = vmatpush3.bf16.msra.mxu1 %v2222_v5  ;;  %1992 = vmatprep.mubr.msk.bf16.mxu1 %vm460_vm1, %v1816_v24  ;;  %v2240_v42 = vld [vmem:[%s2489_s11] sm:$0xff]   ;;  %v2242_v45 = vld [vmem:[%s2489_s11 + $0x8] sm:$0xff]   ;;  %v2246_v46 = vld [vmem:[%s2489_s11 + $0x10] sm:$0xff]  }
  0x1f   : > { %2161 = vmatprep.subr.msk.bf16.mxu1 %vm473_vm0, %v2229_v10  ;;  %2047 = vmatpush3.bf16.msra.mxu0 %v1078_v27  ;;  %v2248_v53 = vld [vmem:[%s2489_s11 + $0x18] sm:$0xff]   ;;  %v2252_v55 = vld [vmem:[%s2489_s11 + $0x4] sm:$0xff]   ;;  %v2254_v58 = vld [vmem:[%s2489_s11 + $0xc] sm:$0xff]  }
  0x20   : > { %2056 = vmatprep.subr.bf16.mxu0 %v2231_v28  ;;  %v2250_v56 = vld [vmem:[%s2437_s21 + $0x20] sm:$0xff]   ;;  %v2257_v59 = vld [vmem:[%s2489_s11 + $0x14] sm:$0xff]   ;;  %v2256_v61 = vld [vmem:[%s2442_s30 + $0x8] sm:$0xff]   ;;  %s402_s21 = scalar_select %p401_p9, %s2290_s24, 3 }
  0x21   : > { %v2255_v57 = vld [vmem:[%s2442_s30] sm:$0xff]   ;;  %v2260_v62 = vld [vmem:[%s2442_s30 + $0x10] sm:$0xff]   ;;  %v2262_v2 = vld [vmem:[%s2489_s11 + $0x8] sm:$0xff]  }
  0x22   : > { %1999 = vmatpush3.bf16.msra.mxu1 %v570_v26  ;;  %v2259_v0 = vld [vmem:[%s2489_s11 + $0x1c] sm:$0xff]   ;;  %v2264_v5 = vld [vmem:[%s2442_s30 + $0x14] sm:$0xff]   ;;  %s1808_s10 = sshll.u32 %s402_s21, 3 }
  0x23   : > { %2008 = vmatprep.subr.bf16.mxu1 %v2233_v23  ;;  %v2261_v4 = vld [vmem:[%s2442_s30 + $0x18] sm:$0xff]   ;;  %v2267_v8 = vld [vmem:[%s2489_s11 + $0x20] sm:$0xff]   ;;  %s405_s22 = sadd.s32 %s1809_s16, %s1808_s10 }
  0x24   : > { %v2266_v7 = vld [vmem:[%s2489_s11 + $0x18] sm:$0xff]   ;;  %s1810_s8 = sshll.u32 %s405_s22, 3  ;;  %v1925_v13 = vld [vmem:[%s2632_s4] ss:$0 sm:$0xff] }
  0x25   : > { %1993 = vmatmul.mubr.msk.bf16.gmra.mrb[4].mxu1 %vm460_vm1, %v1817_v29  ;;  %s2595_s12 = scalar_lea.vmem %s2633_s5, %s1810_s8 }
  0x26   : > { %2000 = vmatprep.mubr.msk.bf16.mxu1 %vm460_vm1, %v1824_v30  ;;  %2049 = vmatmul.mubr.msk.bf16.vlgmr.msra.gmra.mrb[0].mxu0 %vm460_vm1, %v2232_v31 }
  0x27   : > { %2057 = vmatpush3.bf16.msra.mxu0 %v2231_v28  ;;  %2052 = vmatprep.mubr.msk.bf16.mxu0 %vm460_vm1, %v2234_v32 }
  0x28   : > { %2167 = vmatprep.subr.msk.bf16.mxu0 %vm473_vm0, %v2235_v33 }
  0x2b   : > { %2059 = vmatpush3.bf16.msra.mxu0 %v1207_v37 }
  0x2c   : > { %2068 = vmatprep.subr.bf16.mxu0 %v2241_v38 }
  0x2d   : > { %2001 = vmatmul.mubr.msk.bf16.vlgmr.msra.gmra.mrb[0].mxu1 %vm460_vm1, %v1825_v34 }
  0x2e   : > { %2009 = vmatpush3.bf16.msra.mxu1 %v2233_v23  ;;  %2004 = vmatprep.mubr.msk.bf16.mxu1 %vm460_vm1, %v1826_v35 }
  0x2f   : > { %2162 = vmatprep.subr.msk.bf16.mxu1 %vm473_vm0, %v2239_v36  ;;  %2053 = vmatmul.mubr.msk.bf16.gmra.mrb[4].mxu0 %vm460_vm1, %v2236_v39 }
  0x30   : > { %2060 = vmatprep.mubr.msk.bf16.mxu0 %vm460_vm1, %v2240_v42 }
  0x32   : > { %2011 = vmatpush3.bf16.msra.mxu1 %v691_v41 }
  0x33   : > { %2020 = vmatprep.subr.bf16.mxu1 %v2245_v40 }
  0x35   : > { %2005 = vmatmul.mubr.msk.bf16.gmra.mrb[4].mxu1 %vm460_vm1, %v1827_v43 }
  0x36   : > { %2012 = vmatprep.mubr.msk.bf16.mxu1 %vm460_vm1, %v2243_v44 }
  0x37   : > { %2061 = vmatmul.mubr.msk.bf16.vlgmr.msra.gmra.mrb[0].mxu0 %vm460_vm1, %v2242_v45 }
  0x38   : > { %2069 = vmatpush3.bf16.msra.mxu0 %v2241_v38  ;;  %2064 = vmatprep.mubr.msk.bf16.mxu0 %vm460_vm1, %v2246_v46 }
  0x39   : > { %2168 = vmatprep.subr.msk.bf16.mxu0 %vm473_vm0, %v2247_v47 }
  0x3c   : > { %2071 = vmatpush3.bf16.msra.mxu0 %v1336_v51 }
  0x3d   : > { %2013 = vmatmul.mubr.msk.bf16.vlgmr.msra.gmra.mrb[0].mxu1 %vm460_vm1, %v2244_v48  ;;  %2080 = vmatprep.subr.bf16.mxu0 %v2253_v52 }
  0x3e   : > { %2021 = vmatpush3.bf16.msra.mxu1 %v2245_v40  ;;  %2016 = vmatprep.mubr.msk.bf16.mxu1 %vm460_vm1, %v2249_v49 }
  0x3f   : > { %2163 = vmatprep.subr.msk.bf16.mxu1 %vm473_vm0, %v2251_v50  ;;  %2065 = vmatmul.mubr.msk.bf16.gmra.mrb[4].mxu0 %vm460_vm1, %v2248_v53 }
  0x40   : > { %2072 = vmatprep.mubr.msk.bf16.mxu0 %vm460_vm1, %v2252_v55 }
  0x42   : > { %2023 = vmatpush3.bf16.msra.mxu1 %v820_v54 }
  0x43   : > { %2092 = vmatprep.subr.bf16.mxu1 %v2386_v1 }
  0x45   : > { %2017 = vmatmul.mubr.msk.bf16.gmra.mrb[4].mxu1 %vm460_vm1, %v2250_v56 }
  0x46   : > { %2024 = vmatprep.mubr.msk.bf16.mxu1 %vm460_vm1, %v2255_v57 }
  0x47   : > { %2073 = vmatmul.mubr.msk.bf16.vlgmr.msra.gmra.mrb[0].mxu0 %vm460_vm1, %v2254_v58 }
  0x48   : > { %2081 = vmatpush3.bf16.msra.mxu0 %v2253_v52  ;;  %2076 = vmatprep.mubr.msk.bf16.mxu0 %vm460_vm1, %v2257_v59 }
  0x49   : > { %2169 = vmatprep.subr.msk.bf16.mxu0 %vm473_vm0, %v2258_v60 }
  0x4c   : > { %2083 = vmatpush3.bf16.msra.mxu0 %v1465_v63 }
  0x4d   : > { %2025 = vmatmul.mubr.msk.bf16.vlgmr.msra.gmra.mrb[0].mxu1 %vm460_vm1, %v2256_v61 }
  0x4e   : > { %2094 = vmatpush3.bf16.msra.mxu1 %v2386_v1  ;;  %2028 = vmatprep.mubr.msk.bf16.mxu1 %vm460_vm1, %v2260_v62  ;;  %v2263_v1 = vld [vmem:[%s2489_s11 + $0x10] sm:$0xff]  }
  0x4f   : > { %2165 = vmatprep.subr.msk.bf16.mxu1 %vm473_vm0, %v2395_v3  ;;  %2077 = vmatmul.mubr.msk.bf16.gmra.mrb[4].mxu0 %vm460_vm1, %v2259_v0  ;;  %v2265_v3 = vld [vmem:[%s2442_s30 + $0x1c] sm:$0xff]  }
  0x50   : > { %2084 = vmatprep.mubr.msk.bf16.mxu0 %vm460_vm1, %v2262_v2 }
  0x52   : > { %2095 = vmatpush3.bf16.msra.mxu1 %v2411_v6 }
  0x55   : > { %2029 = vmatmul.mubr.msk.bf16.gmra.mrb[4].mxu1 %vm460_vm1, %v2261_v4 }
  0x56   : > { %2040 = vmatprep.mubr.msk.bf16.mxu1 %vm460_vm1, %v2264_v5 }
  0x57   : > { %2085 = vmatmul.mubr.msk.bf16.vlgmr.msra.gmra.mrb[0].mxu0 %vm460_vm1, %v2263_v1 }
  0x58   : > { %2088 = vmatprep.mubr.msk.bf16.mxu0 %vm460_vm1, %v2266_v7 }
  0x5f   : > { %2089 = vmatmul.mubr.msk.bf16.gmra.mrb[4].mxu0 %vm460_vm1, %v2267_v8 }
  0x61   : > { %2041 = vmatmul.mubr.msk.bf16.vlgmr.msra.gmra.mrb[4].mxu1 %vm460_vm1, %v2265_v3 }
 0x120   : > { %v2026_v6 = vpop.f32.mrb[0].mxu1 }
 0x121   : > { %v856_v9 = vpop.f32.mrb[1].mxu1 }
 0x122   : > { %v2027_v10 = vpop.f32.mrb[2].mxu1 }
 0x123   : > { %v859_v11 = vpop.f32.mrb[3].mxu1 }
 0x12a   : > { %v2086_v12 = vpop.f32.mrb[0].mxu0 }
 0x12b   : > { %v2096_v14 = vadd.f32 %v2086_v12, %v2026_v6  ;;  %v1501_v15 = vpop.f32.mrb[1].mxu0 }
 0x12c   : > { %v2097_v16 = vadd.f32 %v1501_v15, %v856_v9  ;;  %v2087_v17 = vpop.f32.mrb[2].mxu0 }
 0x12d   : > { %v1549_v18 = vadd.f32 %v2096_v14, %v1925_v13  ;;  %v2098_v19 = vadd.f32 %v2087_v17, %v2027_v10  ;;  %v1504_v20 = vpop.f32.mrb[3].mxu0 }
 0x12e   : > { %v1547_v21 = vadd.f32 %v2097_v16, %v1925_v13  ;;  %v2099_v22 = vadd.f32 %v1504_v20, %v859_v11 }
 0x12f   : > { %1557 = vst [vmem:[%s2595_s12 + $0x10] sm:$0xff] %v1549_v18  ;;  %v1550_v23 = vadd.f32 %v2098_v19, %v1925_v13  ;;  %v1578_v34 = vmul.f32 %v1549_v18, %v1549_v18 }
 0x130   : > { %1555 = vst [vmem:[%s2595_s12] sm:$0xff] %v1547_v21  ;;  %v1548_v24 = vadd.f32 %v2099_v22, %v1925_v13  ;;  %v1576_v26 = vmul.f32 %v1547_v21, %v1547_v21 }
 0x131   : > { %1558 = vst [vmem:[%s2595_s12 + $0x18] sm:$0xff] %v1550_v23  ;;  %v1579_v40 = vmul.f32 %v1550_v23, %v1550_v23 }
 0x132   : > { %1556 = vst [vmem:[%s2595_s12 + $0x8] sm:$0xff] %v1548_v24  ;;  %v1563_v27 = vadd.f32 %v1548_v24, %v1547_v21  ;;  %v1577_v28 = vmul.f32 %v1548_v24, %v1548_v24  ;;  %v2090_v30 = vpop.f32.mrb[4].mxu0 }
 0x133   : > { %v1517_v33 = vpop.f32.mrb[5].mxu0 }
 0x134   : > { %v2042_v25 = vpop.f32.mrb[4].mxu1  ;;  %v1564_v35 = vadd.f32 %v1563_v27, %v1549_v18  ;;  %v1584_v36 = vadd.f32 %v1577_v28, %v1576_v26  ;;  %v2091_v39 = vpop.f32.mrb[6].mxu0 }
 0x135   : > { %v1001_v29 = vpop.f32.mrb[5].mxu1  ;;  %v2100_v31 = vadd.f32 %v2090_v30, %v2042_v25  ;;  %v1520_v43 = vpop.f32.mrb[7].mxu0 }
 0x136   : > { %v2043_v32 = vpop.f32.mrb[6].mxu1  ;;  %v2101_v37 = vadd.f32 %v1517_v33, %v1001_v29  ;;  %v1585_v44 = vadd.f32 %v1584_v36, %v1578_v34  ;;  %v1565_v46 = vadd.f32 %v1564_v35, %v1550_v23 }
 0x137   : > { %v1004_v38 = vpop.f32.mrb[7].mxu1  ;;  %v1553_v41 = vadd.f32 %v2100_v31, %v1925_v13  ;;  %v2102_v42 = vadd.f32 %v2091_v39, %v2043_v32 }
 0x138   : > { %v1551_v45 = vadd.f32 %v2101_v37, %v1925_v13  ;;  %v2103_v47 = vadd.f32 %v1520_v43, %v1004_v38  ;;  %v1586_v51 = vadd.f32 %v1585_v44, %v1579_v40 }
 0x139   : > { %1561 = vst [vmem:[%s2595_s12 + $0x30] sm:$0xff] %v1553_v41  ;;  %v1554_v48 = vadd.f32 %v2102_v42, %v1925_v13  ;;  %v1582_v56 = vmul.f32 %v1553_v41, %v1553_v41 }
 0x13a   : > { %1559 = vst [vmem:[%s2595_s12 + $0x20] sm:$0xff] %v1551_v45  ;;  %v1566_v49 = vadd.f32 %v1565_v46, %v1551_v45  ;;  %v1580_v50 = vmul.f32 %v1551_v45, %v1551_v45  ;;  %v1552_v52 = vadd.f32 %v2103_v47, %v1925_v13 }
 0x13b   : > { %1562 = vst [vmem:[%s2595_s12 + $0x38] sm:$0xff] %v1554_v48  ;;  %v1583_v59 = vmul.f32 %v1554_v48, %v1554_v48 }
 0x13c   : > { %v1587_v53 = vadd.f32 %v1586_v51, %v1580_v50  ;;  %1560 = vst [vmem:[%s2595_s12 + $0x28] sm:$0xff] %v1552_v52  ;;  %v1567_v54 = vadd.f32 %v1566_v49, %v1552_v52  ;;  %v1581_v55 = vmul.f32 %v1552_v52, %v1552_v52 }
 0x13e   : > { %v1568_v57 = vadd.f32 %v1567_v54, %v1553_v41  ;;  %v1588_v58 = vadd.f32 %v1587_v53, %v1581_v55 }
 0x140   : > { %v1569_v60 = vadd.f32 %v1568_v57, %v1554_v48  ;;  %v1589_v61 = vadd.f32 %v1588_v58, %v1582_v56 }
 0x142   : > { %v1570_v62 = vrot.slane %v1569_v60, 4  ;;  %v1590_v63 = vadd.f32 %v1589_v61, %v1583_v59 }
 0x144   : > { %v1571_v0 = vadd.f32 %v1570_v62, %v1569_v60  ;;  %v1591_v2 = vrot.slane %v1590_v63, 4 }
 0x146   : > { %v1572_v4 = vrot.slane %v1571_v0, 2  ;;  %v1592_v5 = vadd.f32 %v1591_v2, %v1590_v63 }
 0x148   : > { %v1573_v1 = vadd.f32 %v1572_v4, %v1571_v0  ;;  %v1593_v7 = vrot.slane %v1592_v5, 2  ;;  %1600 = sbr.rel (%p1926_p10) target bundleno = 337 (0x151), region = 44 }
 0x14a   : > { %v1574_v3 = vrot.slane %v1573_v1, 1  ;;  %v1594_v8 = vadd.f32 %v1593_v7, %v1592_v5 }
 0x14c   : > { %v1575_v6 = vadd.f32 %v1574_v3, %v1573_v1  ;;  %v1595_v9 = vrot.slane %v1594_v8, 1 }
 0x14e   : > { %v1596_v10 = vadd.f32 %v1595_v9, %v1594_v8  ;;  %1601 = vst [vmem:[%s2431_s14] sm:$0x1] (!%p1926_p10), %v1575_v6 }
 0x150   : > { %1602 = vst [vmem:[%s2448_s9] sm:$0x1] %v1596_v10 }
 0x151 PF: > { %p1927_p11 = scmp.le.s32.totalorder %s2290_s24, 0 }
 0x153   : > { %1606 = sbr.rel (%p1927_p11) target bundleno = 348 (0x15c), region = 48 }
 0x157   : > { %v1607_v11 = vld [vmem:[%s2431_s14] sm:$0x1] (!%p1927_p11) }
 0x158   : > { %v1610_v12 = vld [vmem:[%s2448_s9] sm:$0x1] (!%p1927_p11)  ;;  %v1608_v13 = vadd.f32 (!%p1927_p11), %v1607_v11, %v1575_v6 }
 0x159   : > { %v1611_v14 = vadd.f32 (!%p1927_p11), %v1610_v12, %v1596_v10 }
 0x15a   : > { %1609 = vst [vmem:[%s2431_s14] sm:$0x1] %v1608_v13 }
 0x15b   : > { %1612 = vst [vmem:[%s2448_s9] sm:$0x1] %v1611_v14 }
 0x15c PF: > { %s18_s28 = sadd.s32 1, %s2306_s28   ;;  %s2638_s13 = sld [smem:[#allocation2_spill]] }
 0x15d   : > { %p15_p12 = scmp.ge.s32.totalorder %s18_s28, 10   ;;  %s2639_s24 = smov %s2298_s26 }
 0x15e   : > { %s2640_s25 = smov %s2302_s27  ;;  %s2641_s26 = smov %s2644_s29 }
 0x15f   :  { %17 = sbr.rel (!%p15_p12) target bundleno = 3 (0x3), region = 116 }
 0x162   : > { %s2642_s27 = smov %s2638_s13 }

// kernel: residual_block_3d.5
= control target key start
LH: loop header
LB: loop body
LE: loop exit
PB: predicated region body
PF: predicated region fallthrough
CT: control target
= control target key end

     0   :  { %s748_s12 = smov 0   ;;  %s877_s0 = inlined_call_operand.vmem [shape: bf16[512,4], index: 0, kind: input, shape index: {}]   ;;  %s878_s1 = inlined_call_operand.vmem [shape: bf16[4,128], index: 1, kind: input, shape index: {}]   ;;  %s879_s2 = inlined_call_operand.vmem [shape: f32[1,128], index: 2, kind: input, shape index: {}]   ;;  %s880_s3 = inlined_call_operand.vmem [shape: f32[512,128], index: 3, kind: output, shape index: {}]  }
   0x1 LB: > { %s597_s13 = sadd.s32 4294967295, %s726_s12   ;;  %p601_p0 = scmp.ge.s32.totalorder %s726_s12, 1  ;;  %s726_s12 = sphi %s748_s12, %s13_s12  }
   0x2   : > { %p138_p1 = scmp.lt.s32.totalorder %s726_s12, 3 }
   0x4   : > { %p139_p2 = pnand %p601_p0, %p138_p1 }
   0x5   : > { %v207_v0 = vld [vmem:[%s878_s1] sm:$0x3] (!%p139_p2)  ;;  %vm344_vm0 = vcmask (!%p139_p2), 1041408   ;;  %s602_s16 = sshll.u32 (!%p139_p2), %s597_s13, 5  ;;  %vm295_vm1 = vcmask (!%p139_p2), 31744  }
   0x6   : > { %142 = sbr.rel (%p139_p2) target bundleno = 261 (0x105), region = 32  ;;  %694 = vmatprep.subr.msk.bf16.mxu0 (!%p139_p2), %vm344_vm0, %v207_v0  ;;  %695 = vmatprep.subr.msk.bf16.mxu1 (!%p139_p2), %vm344_vm0, %v207_v0  ;;  %v346_v1 = vsel (!%p139_p2), %vm344_vm0, %v207_v0, 0  ;;  %p163_p3 = scmp.lt.s32.totalorder (!%p139_p2), %s602_s16, 63  ;;  %v803_v18 = vld [vmem:[%s879_s2] ss:$0 sm:$0xff] (!%p139_p2) }
   0x7   : > { %659 = vmatpush3.bf16.msra.mxu0 (!%p139_p2), %v346_v1  ;;  %693 = vmatpush3.bf16.msra.mxu1 (!%p139_p2), %v346_v1 }
   0xd   : > { %s882_s16 = smov (!%p163_p3, %s602_s16), 63 }
   0xe   : > { %s603_s17 = sshll.u32 %s882_s16, 2  ;;  %s605_s21 = sshll.u32 %s882_s16, 3 }
   0xf   : > { %s765_s20 = scalar_lea.vmem %s877_s0, %s603_s17  ;;  %s808_s26 = scalar_lea.vmem %s880_s3, %s605_s21 }
  0x10   : > { %v704_v2 = vld [vmem:[%s765_s20] sm:$0xff]   ;;  %v706_v4 = vld [vmem:[%s765_s20 + $0x8] sm:$0xff]   ;;  %v708_v6 = vld [vmem:[%s765_s20 + $0x10] sm:$0xff]  }
  0x11   : > { %v705_v3 = vld [vmem:[%s765_s20 + $0x40] sm:$0xff]   ;;  %660 = vmatprep.mubr.msk.bf16.mxu0 %vm295_vm1, %v704_v2  ;;  %v707_v5 = vld [vmem:[%s765_s20 + $0x48] sm:$0xff]   ;;  %v709_v7 = vld [vmem:[%s765_s20 + $0x50] sm:$0xff]  }
  0x12   : > { %676 = vmatprep.mubr.msk.bf16.mxu1 %vm295_vm1, %v705_v3  ;;  %661 = vmatmul.mubr.msk.bf16.vlgmr.msra.gmra.mrb[0].mxu0 %vm295_vm1, %v706_v4  ;;  %v710_v8 = vld [vmem:[%s765_s20 + $0x18] sm:$0xff]   ;;  %v712_v10 = vld [vmem:[%s765_s20 + $0x20] sm:$0xff]   ;;  %v714_v12 = vld [vmem:[%s765_s20 + $0x28] sm:$0xff]  }
  0x13   : > { %677 = vmatmul.mubr.msk.bf16.vlgmr.msra.gmra.mrb[0].mxu1 %vm295_vm1, %v707_v5  ;;  %664 = vmatprep.mubr.msk.bf16.mxu0 %vm295_vm1, %v708_v6  ;;  %v711_v9 = vld [vmem:[%s765_s20 + $0x58] sm:$0xff]   ;;  %v713_v11 = vld [vmem:[%s765_s20 + $0x60] sm:$0xff]   ;;  %v715_v13 = vld [vmem:[%s765_s20 + $0x68] sm:$0xff]  }
  0x14   : > { %680 = vmatprep.mubr.msk.bf16.mxu1 %vm295_vm1, %v709_v7  ;;  %v716_v14 = vld [vmem:[%s765_s20 + $0x30] sm:$0xff]   ;;  %v718_v16 = vld [vmem:[%s765_s20 + $0x38] sm:$0xff]  }
  0x15   : > { %v717_v15 = vld [vmem:[%s765_s20 + $0x70] sm:$0xff]   ;;  %v719_v17 = vld [vmem:[%s765_s20 + $0x78] sm:$0xff]  }
  0x1a   : > { %665 = vmatmul.mubr.msk.bf16.gmra.mrb[4].mxu0 %vm295_vm1, %v710_v8 }
  0x1b   : > { %681 = vmatmul.mubr.msk.bf16.gmra.mrb[4].mxu1 %vm295_vm1, %v711_v9  ;;  %668 = vmatprep.mubr.msk.bf16.mxu0 %vm295_vm1, %v712_v10 }
  0x1c   : > { %684 = vmatprep.mubr.msk.bf16.mxu1 %vm295_vm1, %v713_v11 }
  0x22   : > { %669 = vmatmul.mubr.msk.bf16.gmra.mrb[8].mxu0 %vm295_vm1, %v714_v12 }
  0x23   : > { %685 = vmatmul.mubr.msk.bf16.gmra.mrb[8].mxu1 %vm295_vm1, %v715_v13  ;;  %672 = vmatprep.mubr.msk.bf16.mxu0 %vm295_vm1, %v716_v14 }
  0x24   : > { %688 = vmatprep.mubr.msk.bf16.mxu1 %vm295_vm1, %v717_v15 }
  0x2a   : > { %673 = vmatmul.mubr.msk.bf16.gmra.mrb[12].mxu0 %vm295_vm1, %v718_v16 }
  0x2b   : > { %689 = vmatmul.mubr.msk.bf16.gmra.mrb[12].mxu1 %vm295_vm1, %v719_v17 }
  0xe5   : > { %v662_v19 = vpop.f32.mrb[0].mxu0 }
  0xe6   : > { %v391_v20 = vadd.f32 %v662_v19, %v803_v18  ;;  %v678_v21 = vpop.f32.mrb[0].mxu1  ;;  %v382_v22 = vpop.f32.mrb[1].mxu0 }
  0xe7   : > { %v455_v23 = vadd.f32 %v678_v21, %v803_v18  ;;  %v383_v24 = vadd.f32 %v803_v18, %v382_v22  ;;  %v446_v25 = vpop.f32.mrb[1].mxu1  ;;  %v663_v26 = vpop.f32.mrb[2].mxu0 }
  0xe8   : > { %511 = vst [vmem:[%s808_s26 + $0x10] sm:$0xff] %v391_v20  ;;  %v447_v27 = vadd.f32 %v803_v18, %v446_v25  ;;  %v394_v28 = vadd.f32 %v663_v26, %v803_v18  ;;  %v679_v29 = vpop.f32.mrb[2].mxu1  ;;  %v385_v30 = vpop.f32.mrb[3].mxu0 }
  0xe9   : > { %527 = vst [vmem:[%s808_s26 + $0x90] sm:$0xff] %v455_v23  ;;  %509 = vst [vmem:[%s808_s26] sm:$0xff] %v383_v24  ;;  %v458_v31 = vadd.f32 %v679_v29, %v803_v18  ;;  %v386_v32 = vadd.f32 %v803_v18, %v385_v30  ;;  %v449_v33 = vpop.f32.mrb[3].mxu1 }
  0xea   : > { %525 = vst [vmem:[%s808_s26 + $0x80] sm:$0xff] %v447_v27  ;;  %512 = vst [vmem:[%s808_s26 + $0x18] sm:$0xff] %v394_v28  ;;  %v450_v34 = vadd.f32 %v803_v18, %v449_v33 }
  0xeb   : > { %528 = vst [vmem:[%s808_s26 + $0x98] sm:$0xff] %v458_v31  ;;  %510 = vst [vmem:[%s808_s26 + $0x8] sm:$0xff] %v386_v32 }
  0xec   : > { %526 = vst [vmem:[%s808_s26 + $0x88] sm:$0xff] %v450_v34 }
  0xed   : > { %v666_v35 = vpop.f32.mrb[4].mxu0 }
  0xee   : > { %v407_v36 = vadd.f32 %v666_v35, %v803_v18  ;;  %v682_v37 = vpop.f32.mrb[4].mxu1  ;;  %v398_v38 = vpop.f32.mrb[5].mxu0 }
  0xef   : > { %v471_v39 = vadd.f32 %v682_v37, %v803_v18  ;;  %v399_v40 = vadd.f32 %v803_v18, %v398_v38  ;;  %v462_v41 = vpop.f32.mrb[5].mxu1  ;;  %v667_v42 = vpop.f32.mrb[6].mxu0 }
  0xf0   : > { %515 = vst [vmem:[%s808_s26 + $0x30] sm:$0xff] %v407_v36  ;;  %v463_v43 = vadd.f32 %v803_v18, %v462_v41  ;;  %v410_v44 = vadd.f32 %v667_v42, %v803_v18  ;;  %v683_v45 = vpop.f32.mrb[6].mxu1  ;;  %v401_v46 = vpop.f32.mrb[7].mxu0 }
  0xf1   : > { %531 = vst [vmem:[%s808_s26 + $0xb0] sm:$0xff] %v471_v39  ;;  %513 = vst [vmem:[%s808_s26 + $0x20] sm:$0xff] %v399_v40  ;;  %v474_v47 = vadd.f32 %v683_v45, %v803_v18  ;;  %v402_v48 = vadd.f32 %v803_v18, %v401_v46  ;;  %v465_v49 = vpop.f32.mrb[7].mxu1 }
  0xf2   : > { %529 = vst [vmem:[%s808_s26 + $0xa0] sm:$0xff] %v463_v43  ;;  %516 = vst [vmem:[%s808_s26 + $0x38] sm:$0xff] %v410_v44  ;;  %v466_v50 = vadd.f32 %v803_v18, %v465_v49 }
  0xf3   : > { %532 = vst [vmem:[%s808_s26 + $0xb8] sm:$0xff] %v474_v47  ;;  %514 = vst [vmem:[%s808_s26 + $0x28] sm:$0xff] %v402_v48 }
  0xf4   : > { %530 = vst [vmem:[%s808_s26 + $0xa8] sm:$0xff] %v466_v50 }
  0xf5   : > { %v670_v51 = vpop.f32.mrb[8].mxu0 }
  0xf6   : > { %v423_v52 = vadd.f32 %v670_v51, %v803_v18  ;;  %v686_v53 = vpop.f32.mrb[8].mxu1  ;;  %v414_v54 = vpop.f32.mrb[9].mxu0 }
  0xf7   : > { %v487_v55 = vadd.f32 %v686_v53, %v803_v18  ;;  %v415_v56 = vadd.f32 %v803_v18, %v414_v54  ;;  %v478_v57 = vpop.f32.mrb[9].mxu1  ;;  %v671_v58 = vpop.f32.mrb[10].mxu0 }
  0xf8   : > { %519 = vst [vmem:[%s808_s26 + $0x50] sm:$0xff] %v423_v52  ;;  %v479_v59 = vadd.f32 %v803_v18, %v478_v57  ;;  %v426_v60 = vadd.f32 %v671_v58, %v803_v18  ;;  %v687_v61 = vpop.f32.mrb[10].mxu1  ;;  %v417_v62 = vpop.f32.mrb[11].mxu0 }
  0xf9   : > { %535 = vst [vmem:[%s808_s26 + $0xd0] sm:$0xff] %v487_v55  ;;  %517 = vst [vmem:[%s808_s26 + $0x40] sm:$0xff] %v415_v56  ;;  %v490_v63 = vadd.f32 %v687_v61, %v803_v18  ;;  %v418_v0 = vadd.f32 %v803_v18, %v417_v62  ;;  %v481_v1 = vpop.f32.mrb[11].mxu1 }
  0xfa   : > { %533 = vst [vmem:[%s808_s26 + $0xc0] sm:$0xff] %v479_v59  ;;  %520 = vst [vmem:[%s808_s26 + $0x58] sm:$0xff] %v426_v60  ;;  %v482_v2 = vadd.f32 %v803_v18, %v481_v1 }
  0xfb   : > { %536 = vst [vmem:[%s808_s26 + $0xd8] sm:$0xff] %v490_v63  ;;  %518 = vst [vmem:[%s808_s26 + $0x48] sm:$0xff] %v418_v0 }
  0xfc   : > { %534 = vst [vmem:[%s808_s26 + $0xc8] sm:$0xff] %v482_v2 }
  0xfd   : > { %v674_v3 = vpop.f32.mrb[12].mxu0 }
  0xfe   : > { %v439_v4 = vadd.f32 %v674_v3, %v803_v18  ;;  %v690_v5 = vpop.f32.mrb[12].mxu1  ;;  %v430_v6 = vpop.f32.mrb[13].mxu0 }
  0xff   : > { %v503_v7 = vadd.f32 %v690_v5, %v803_v18  ;;  %v431_v8 = vadd.f32 %v803_v18, %v430_v6  ;;  %v494_v9 = vpop.f32.mrb[13].mxu1  ;;  %v675_v10 = vpop.f32.mrb[14].mxu0 }
 0x100   : > { %523 = vst [vmem:[%s808_s26 + $0x70] sm:$0xff] %v439_v4  ;;  %v495_v11 = vadd.f32 %v803_v18, %v494_v9  ;;  %v442_v12 = vadd.f32 %v675_v10, %v803_v18  ;;  %v691_v13 = vpop.f32.mrb[14].mxu1  ;;  %v433_v14 = vpop.f32.mrb[15].mxu0 }
 0x101   : > { %539 = vst [vmem:[%s808_s26 + $0xf0] sm:$0xff] %v503_v7  ;;  %521 = vst [vmem:[%s808_s26 + $0x60] sm:$0xff] %v431_v8  ;;  %v506_v15 = vadd.f32 %v691_v13, %v803_v18  ;;  %v434_v16 = vadd.f32 %v803_v18, %v433_v14  ;;  %v497_v17 = vpop.f32.mrb[15].mxu1 }
 0x102   : > { %537 = vst [vmem:[%s808_s26 + $0xe0] sm:$0xff] %v495_v11  ;;  %524 = vst [vmem:[%s808_s26 + $0x78] sm:$0xff] %v442_v12  ;;  %v498_v19 = vadd.f32 %v803_v18, %v497_v17 }
 0x103   : > { %540 = vst [vmem:[%s808_s26 + $0xf8] sm:$0xff] %v506_v15  ;;  %522 = vst [vmem:[%s808_s26 + $0x68] sm:$0xff] %v434_v16 }
 0x104   : > { %538 = vst [vmem:[%s808_s26 + $0xe8] sm:$0xff] %v498_v19 }
 0x105 PF: > { %s13_s12 = sadd.s32 1, %s726_s12  }
 0x106   : > { %p10_p4 = scmp.ge.s32.totalorder %s13_s12, 4  }
 0x108   :  { %12 = sbr.rel (!%p10_p4) target bundleno = 1 (0x1), region = 62 }

// kernel: residual_block_3d.9
= control target key start
LH: loop header
LB: loop body
LE: loop exit
PB: predicated region body
PF: predicated region fallthrough
CT: control target
= control target key end

     0   :  { %s623_s15 = smov 0   ;;  %s625_s16 = smov 0   ;;  %s698_s0 = inlined_call_operand.vmem [shape: f32[2,4,64,128], index: 0, kind: input, shape index: {}]   ;;  %s699_s1 = inlined_call_operand.vmem [shape: f32[2,1,128], index: 1, kind: input, shape index: {}]   ;;  %s700_s2 = inlined_call_operand.vmem [shape: f32[2,1,128], index: 2, kind: input, shape index: {}]   ;;  %s701_s3 = inlined_call_operand.vmem [shape: f32[2,4,64,128], index: 3, kind: input, shape index: {}]   ;;  %s702_s4 = inlined_call_operand.vmem [shape: f32[2,4,64,128], index: 4, kind: output, shape index: {}]  }
   0x1   :  { %s627_s17 = smov 0   ;;  %s629_s18 = smov 0  }
   0x2   :  { %s631_s19 = smov 0  }
   0x3 LB: > { %s23_s20 = sadd.s32 1, %s588_s17  ;;  %s26_s21 = sadd.s32 1, %s592_s18  ;;  %s596_s19 = sphi %s631_s19, %s14_s19   ;;  %s592_s18 = sphi %s629_s18, %s706_s18   ;;  %s588_s17 = sphi %s627_s17, %s705_s17   ;;  %s584_s16 = sphi %s625_s16, %s704_s16   ;;  %s580_s15 = sphi %s623_s15, %s703_s15  }
   0x4   : > { %p24_p0 = scmp.ge.s32.totalorder %s23_s20, 4  ;;  %p504_p1 = scmp.ge.s32.totalorder %s596_s19, 1 }
   0x5   : > { %p214_p2 = scmp.lt.s32.totalorder %s596_s19, 9 }
   0x6   : > { %s708_s20 = smov (%p24_p0, %s23_s20), 0  ;;  %s710_s21 = smov (!%p24_p0, %s26_s21), %s592_s18 }
   0x7   : > { %p215_p3 = pnand %p504_p1, %p214_p2  ;;  %p28_p4 = scmp.ge.s32.totalorder %s710_s21, 2 }
   0x8   : > { %p263_p5 = scmp.lt.s32.totalorder (!%p215_p3), %s584_s16, 1  ;;  %p265_p6 = scmp.lt.s32.totalorder (!%p215_p3), %s580_s15, 3 }
   0x9   : > { %s712_s21 = smov (%p28_p4, %s710_s21), 0  ;;  %218 = sbr.rel (%p215_p3) target bundleno = 37 (0x25), region = 36 }
  0x10   : > { %s714_s16 = smov (!%p263_p5, %s584_s16), 1  ;;  %s716_s15 = smov (!%p265_p6, %s580_s15), 3 }
  0x11   : > { %s506_s22 = sshll.u32 %s714_s16, 5  ;;  %s274_s25 = scalar_lea.vmem %s699_s1, %s714_s16 }
  0x12   : > { %s505_s26 = sshll.u32 %s716_s15, 3  ;;  %s277_s30 = scalar_lea.vmem %s700_s2, %s714_s16  ;;  %v514_v0 = vld [vmem:[%s274_s25] ss:$0 sm:$0xff] }
  0x13   : > { %s269_s27 = sadd.s32 %s506_s22, %s505_s26  ;;  %v515_v2 = vld [vmem:[%s277_s30] ss:$0 sm:$0xff] }
  0x14   : > { %s659_s5 = sshll.u32 %s269_s27, 3 }
  0x15   : > { %s271_s8 = scalar_lea.vmem %s698_s0, %s659_s5  ;;  %s669_s11 = scalar_lea.vmem %s701_s3, %s659_s5 }
  0x16   : > { %v296_v1 = vld [vmem:[%s271_s8] sm:$0xff]  ;;  %v297_v3 = vld [vmem:[%s271_s8 + $0x8] sm:$0xff]  ;;  %v298_v7 = vld [vmem:[%s271_s8 + $0x10] sm:$0xff]  ;;  %s295_s14 = scalar_lea.vmem %s702_s4, %s659_s5 }
  0x17   : > { %v311_v4 = vmul.f32 %v514_v0, %v296_v1  ;;  %v334_v5 = vld [vmem:[%s669_s11] sm:$0xff]  ;;  %v312_v6 = vmul.f32 %v514_v0, %v297_v3  ;;  %v335_v8 = vld [vmem:[%s669_s11 + $0x8] sm:$0xff]  ;;  %v313_v9 = vmul.f32 %v514_v0, %v298_v7  ;;  %v299_v10 = vld [vmem:[%s271_s8 + $0x18] sm:$0xff] }
  0x18   : > { %v300_v11 = vld [vmem:[%s271_s8 + $0x20] sm:$0xff]  ;;  %v336_v14 = vld [vmem:[%s669_s11 + $0x10] sm:$0xff]  ;;  %v314_v15 = vmul.f32 %v514_v0, %v299_v10  ;;  %v337_v16 = vld [vmem:[%s669_s11 + $0x18] sm:$0xff] }
  0x19   : > { %v326_v12 = vadd.f32 %v515_v2, %v311_v4  ;;  %v327_v13 = vadd.f32 %v515_v2, %v312_v6  ;;  %v315_v17 = vmul.f32 %v514_v0, %v300_v11  ;;  %v301_v18 = vld [vmem:[%s271_s8 + $0x28] sm:$0xff]  ;;  %v328_v19 = vadd.f32 %v515_v2, %v313_v9  ;;  %v338_v20 = vld [vmem:[%s669_s11 + $0x20] sm:$0xff]  ;;  %v302_v22 = vld [vmem:[%s271_s8 + $0x30] sm:$0xff] }
  0x1a   : > { %v316_v21 = vmul.f32 %v514_v0, %v301_v18  ;;  %v303_v23 = vld [vmem:[%s271_s8 + $0x38] sm:$0xff]  ;;  %v329_v26 = vadd.f32 %v515_v2, %v314_v15  ;;  %v339_v28 = vld [vmem:[%s669_s11 + $0x28] sm:$0xff]  ;;  %v317_v31 = vmul.f32 %v514_v0, %v302_v22  ;;  %v340_v37 = vld [vmem:[%s669_s11 + $0x30] sm:$0xff] }
  0x1b   : > { %v342_v24 = vadd.f32 %v334_v5, %v326_v12  ;;  %v343_v25 = vadd.f32 %v335_v8, %v327_v13  ;;  %v330_v27 = vadd.f32 %v515_v2, %v315_v17  ;;  %v344_v29 = vadd.f32 %v336_v14, %v328_v19  ;;  %v341_v38 = vld [vmem:[%s669_s11 + $0x38] sm:$0xff] }
  0x1c   : > { %v331_v30 = vadd.f32 %v515_v2, %v316_v21  ;;  %v318_v32 = vmul.f32 %v514_v0, %v303_v23  ;;  %v345_v35 = vadd.f32 %v337_v16, %v329_v26  ;;  %v332_v41 = vadd.f32 %v515_v2, %v317_v31 }
  0x1d   : > { %v350_v33 = vmax.f32 %v342_v24, 0.0  ;;  %v351_v34 = vmax.f32 %v343_v25, 0.0  ;;  %v346_v36 = vadd.f32 %v338_v20, %v330_v27  ;;  %v352_v39 = vmax.f32 %v344_v29, 0.0 }
  0x1e   : > { %v347_v40 = vadd.f32 %v339_v28, %v331_v30  ;;  %v333_v42 = vadd.f32 %v515_v2, %v318_v32  ;;  %v353_v43 = vmax.f32 %v345_v35, 0.0  ;;  %v348_v46 = vadd.f32 %v340_v37, %v332_v41 }
  0x1f   : > { %358 = vst [vmem:[%s295_s14] sm:$0xff] %v350_v33  ;;  %359 = vst [vmem:[%s295_s14 + $0x8] sm:$0xff] %v351_v34  ;;  %v354_v44 = vmax.f32 %v346_v36, 0.0 }
  0x20   : > { %360 = vst [vmem:[%s295_s14 + $0x10] sm:$0xff] %v352_v39  ;;  %v355_v45 = vmax.f32 %v347_v40, 0.0  ;;  %v349_v47 = vadd.f32 %v341_v38, %v333_v42  ;;  %361 = vst [vmem:[%s295_s14 + $0x18] sm:$0xff] %v353_v43  ;;  %v356_v48 = vmax.f32 %v348_v46, 0.0 }
  0x21   : > { %362 = vst [vmem:[%s295_s14 + $0x20] sm:$0xff] %v354_v44 }
  0x22   : > { %363 = vst [vmem:[%s295_s14 + $0x28] sm:$0xff] %v355_v45  ;;  %v357_v49 = vmax.f32 %v349_v47, 0.0  ;;  %364 = vst [vmem:[%s295_s14 + $0x30] sm:$0xff] %v356_v48 }
  0x24   : > { %365 = vst [vmem:[%s295_s14 + $0x38] sm:$0xff] %v357_v49 }
  0x25 PF: > { %s14_s19 = sadd.s32 1, %s596_s19   ;;  %s703_s15 = smov %s588_s17 }
  0x26   : > { %p11_p7 = scmp.ge.s32.totalorder %s14_s19, 10   ;;  %s704_s16 = smov %s592_s18 }
  0x27   : > { %s705_s17 = smov %s708_s20  ;;  %s706_s18 = smov %s712_s21 }
  0x28   :  { %13 = sbr.rel (!%p11_p7) target bundleno = 3 (0x3), region = 75 }

</bundles_post_ra>
